<compile_context>
chip_gen: v7x
topology: tpu7x:2x2x1
jax: 0.10.0
libtpu: 0.0.40
codegen_flags: <defaults>
</compile_context>

<pallas_src>
import math

import jax
import jax.numpy as jnp
from jax import lax
from jax.experimental import pallas as pl
from jax.experimental.pallas import tpu as pltpu


def _svrp_policy_kernel(cust_ref, veh_ref, dem_ref, h0_ref,
                        wc_ref, bc_ref, wih_ref, whh_ref, bih_ref, bhh_ref,
                        logp_ref, hout_ref, mem_ref):
    V, Bt, E = mem_ref.shape
    Npad = dem_ref.shape[1]

    # ---- Customer encoder: Linear + ReLU (1/sqrt(E) already folded into Wc/bc) ----
    state3 = jnp.dot(cust_ref[...], wc_ref[...],
                     preferred_element_type=jnp.float32) + bc_ref[...]
    state3 = jnp.maximum(state3, 0.0)                                  # [Bt, Npad, E]

    # ---- Vehicle encoder: single-layer GRU over the vehicle axis ----
    # Hoisted input-gate matmul (does not depend on h): one matmul for all V steps.
    gx3 = jnp.dot(veh_ref[...], wih_ref[...],
                  preferred_element_type=jnp.float32) + bih_ref[...]   # [V, Bt, 3E]

    whh = whh_ref[...]                                                 # [E, 3E]
    bhh = jnp.broadcast_to(bhh_ref[...], (Bt, 3 * E))                  # hoisted broadcast
    h = h0_ref[...]                                                    # [Bt, E]
    for v in range(V):                                                 # V is small & static
        gx = gx3[v]                                                    # [Bt, 3E]
        gh = jnp.dot(h, whh, preferred_element_type=jnp.float32) + bhh
        r = jax.nn.sigmoid(gx[:, :E] + gh[:, :E])
        z = jax.nn.sigmoid(gx[:, E:2 * E] + gh[:, E:2 * E])
        n = jnp.tanh(gx[:, 2 * E:] + r * gh[:, 2 * E:])
        h = (1.0 - z) * n + z * h                                      # [Bt, E]
        mem_ref[v] = h                                                 # contiguous tile store
    hout_ref[...] = h

    # ---- Attention: batched scaled dot-product + masked softmax over nodes ----
    memory = mem_ref[...]                                              # [V, Bt, E] (vehicle-major)
    scores = lax.dot_general(memory, state3,
                             dimension_numbers=(((2,), (2,)), ((1,), (0,))),
                             preferred_element_type=jnp.float32)       # [Bt, V, Npad]
    valid = (dem_ref[...] > 0.0)[:, None, :]                           # MaskingLayer (pads masked too)
    scores = jnp.where(valid, scores, jnp.float32(-1e9))
    m = jnp.max(scores, axis=-1, keepdims=True)
    p = jnp.exp(scores - m)
    denom = jnp.sum(p, axis=-1, keepdims=True)
    probs = p / denom                                                  # exact division
    logp_ref[...] = jnp.log(probs + 1e-10)                             # [Bt, V, Npad] direct store


def init_params(key, customer_input_dim, vehicle_input_dim, embedding_dim):
    Dc, Dv, E = customer_input_dim, vehicle_input_dim, embedding_dim
    ks = jax.random.split(key, 6)
    s = 0.1
    return {
        "Wc":   (s * jax.random.normal(ks[0], (Dc, E))).astype(jnp.float32),
        "bc":   (s * jax.random.normal(ks[1], (1, E))).astype(jnp.float32),
        "W_ih": (s * jax.random.normal(ks[2], (Dv, 3 * E))).astype(jnp.float32),
        "W_hh": (s * jax.random.normal(ks[3], (E, 3 * E))).astype(jnp.float32),
        "b_ih": (s * jax.random.normal(ks[4], (1, 3 * E))).astype(jnp.float32),
        "b_hh": (s * jax.random.normal(ks[5], (1, 3 * E))).astype(jnp.float32),
    }


def _round_up(x, m):
    return ((x + m - 1) // m) * m


def svrp_policy_forward(customer_features, vehicle_features, demands, params, hidden=None):
    B, N, Dc = customer_features.shape
    _, V, Dv = vehicle_features.shape
    E = params["Wc"].shape[1]
    f32 = jnp.float32

    if hidden is None:
        hidden = jnp.zeros((B, 1, E), f32)
    h0 = hidden.reshape(B, E).astype(f32)

    # Fold the 1/sqrt(E) attention scale into the customer-encoder weights (ReLU
    # commutes with a positive scale) -> no per-element scale in the kernel.
    inv_sqrt_e = 1.0 / math.sqrt(E)
    wc = (params["Wc"] * inv_sqrt_e).astype(f32)
    bc = (params["bc"] * inv_sqrt_e).astype(f32)

    # Lane-dense node axis: pad N up to a multiple of 128.  Padded nodes get demand 0,
    # so the mask removes them from every softmax; the wrapper slices back to N.
    Npad = max(128, _round_up(N, 128))
    cust = customer_features.astype(f32)
    dem = demands.astype(f32)
    if Npad != N:
        cust = jnp.pad(cust, ((0, 0), (0, Npad - N), (0, 0)))
        dem = jnp.pad(dem, ((0, 0), (0, Npad - N)))

    # Batch tile: large enough to amortize per-step overhead and feed the MXU,
    # always a multiple of 8 (sublane), and never larger than the (padded) batch.
    Bt = min(128, _round_up(B, 8))
    Bp = _round_up(B, Bt)
    # Keep >= 2 grid steps when the batch allows it so the "parallel" batch axis
    # can be sharded across both v7x TensorCores (no effect on v5e/v6e).
    if Bp // Bt == 1 and Bt >= 16:
        Bt = _round_up(Bt // 2, 8)
        Bp = _round_up(B, Bt)

    veh = vehicle_features.astype(f32)
    if Bp != B:
        pad = Bp - B
        cust = jnp.pad(cust, ((0, pad), (0, 0), (0, 0)))
        dem = jnp.pad(dem, ((0, pad), (0, 0)))
        veh = jnp.pad(veh, ((0, pad), (0, 0), (0, 0)))
        h0 = jnp.pad(h0, ((0, pad), (0, 0)))
    # Vehicle-major layout so the hoisted gate matmul is sliced contiguously per GRU step.
    veh_t = jnp.transpose(veh, (1, 0, 2))                              # [V, Bp, Dv]

    grid_spec = pltpu.PrefetchScalarGridSpec(
        num_scalar_prefetch=0,
        grid=(Bp // Bt,),
        in_specs=[
            pl.BlockSpec((Bt, Npad, Dc), lambda b: (b, 0, 0)),         # customer_features (padded)
            pl.BlockSpec((V, Bt, Dv), lambda b: (0, b, 0)),            # vehicle_features (vehicle-major)
            pl.BlockSpec((Bt, Npad), lambda b: (b, 0)),                # demands (padded)
            pl.BlockSpec((Bt, E), lambda b: (b, 0)),                   # hidden h0
            pl.BlockSpec((Dc, E), lambda b: (0, 0)),                   # Wc (pre-scaled)
            pl.BlockSpec((1, E), lambda b: (0, 0)),                    # bc (pre-scaled)
            pl.BlockSpec((Dv, 3 * E), lambda b: (0, 0)),               # W_ih
            pl.BlockSpec((E, 3 * E), lambda b: (0, 0)),                # W_hh
            pl.BlockSpec((1, 3 * E), lambda b: (0, 0)),                # b_ih
            pl.BlockSpec((1, 3 * E), lambda b: (0, 0)),                # b_hh
        ],
        out_specs=[
            pl.BlockSpec((Bt, V, Npad), lambda b: (b, 0, 0)),          # log_probs (no relayout)
            pl.BlockSpec((Bt, E), lambda b: (b, 0)),                   # updated hidden
        ],
        scratch_shapes=[pltpu.VMEM((V, Bt, E), jnp.float32)],          # vehicle-major GRU memory
    )
    logp_pad, h_out = pl.pallas_call(
        _svrp_policy_kernel,
        grid_spec=grid_spec,
        out_shape=(
            jax.ShapeDtypeStruct((Bp, V, Npad), jnp.float32),
            jax.ShapeDtypeStruct((Bp, E), jnp.float32),
        ),
        compiler_params=pltpu.CompilerParams(dimension_semantics=("parallel",)),
    )(cust, veh_t, dem, h0,
      wc, bc, params["W_ih"], params["W_hh"], params["b_ih"], params["b_hh"])

    log_probs = logp_pad[:B, :, :N]
    hidden_out = h_out[:B].reshape(B, 1, E)
    return log_probs, hidden_out


def _reference_forward(customer_features, vehicle_features, demands, params, hidden=None):
    """Pure-JAX reference for correctness check."""
    B, N, _ = customer_features.shape
    _, V, _ = vehicle_features.shape
    E = params["Wc"].shape[1]
    if hidden is None:
        hidden = jnp.zeros((B, 1, E), jnp.float32)
    state = jnp.maximum(customer_features @ params["Wc"] + params["bc"], 0.0)  # [B,N,E]
    h = hidden[:, 0, :]                                                        # [B,E]
    mem = []
    for v in range(V):
        x = vehicle_features[:, v, :]
        gx = x @ params["W_ih"] + params["b_ih"]
        gh = h @ params["W_hh"] + params["b_hh"]
        r = jax.nn.sigmoid(gx[:, :E] + gh[:, :E])
        z = jax.nn.sigmoid(gx[:, E:2 * E] + gh[:, E:2 * E])
        n = jnp.tanh(gx[:, 2 * E:] + r * gh[:, 2 * E:])
        h = (1.0 - z) * n + z * h
        mem.append(h)
    memory = jnp.stack(mem, axis=1)                                            # [B,V,E]
    scores = jnp.einsum("bve,bne->bvn", memory, state) / jnp.sqrt(jnp.float32(E))
    valid = (demands > 0.0)[:, None, :]
    scores = jnp.where(valid, scores, -1e9)
    probs = jax.nn.softmax(scores, axis=-1)
    return jnp.log(probs + 1e-10), h[:, None, :]


if __name__ == "__main__":
    B, N, V = 2, 16, 4       # batch, num_nodes, num_vehicles
    Dc, Dv, E = 7, 4, 32     # customer feat dim, vehicle feat dim, embedding dim

    key = jax.random.PRNGKey(0)
    kp, k1, k2, k3 = jax.random.split(key, 4)
    params = init_params(kp, Dc, Dv, E)

    customer_features = jax.random.normal(k1, (B, N, Dc), jnp.float32)
    vehicle_features = jax.random.normal(k2, (B, V, Dv), jnp.float32)
    demands = jax.random.uniform(k3, (B, N), jnp.float32)
    demands = demands.at[:, 3].set(0.0).at[0, 7].set(0.0)   # exercise masking

    log_probs, hidden = svrp_policy_forward(customer_features, vehicle_features, demands, params)
    jax.block_until_ready((log_probs, hidden))

    ref_lp, ref_h = _reference_forward(customer_features, vehicle_features, demands, params)
    assert log_probs.shape == (B, V, N) and hidden.shape == (B, 1, E)
    assert jnp.allclose(log_probs, ref_lp, atol=1e-4, rtol=1e-4)
    assert jnp.allclose(hidden, ref_h, atol=1e-5, rtol=1e-5)

    print("KERNEL_OK")
</pallas_src>

<mosaic_0001>
module attributes {stable_mosaic.version = 11 : i64} {
  func.func @_svrp_policy_kernel(%arg0: i32, %arg1: memref<8x128x7xf32, #tpu.memory_space<vmem>>, %arg2: memref<4x8x4xf32, #tpu.memory_space<vmem>>, %arg3: memref<8x128xf32, #tpu.memory_space<vmem>>, %arg4: memref<8x32xf32, #tpu.memory_space<vmem>>, %arg5: memref<7x32xf32, #tpu.memory_space<vmem>>, %arg6: memref<1x32xf32, #tpu.memory_space<vmem>>, %arg7: memref<4x96xf32, #tpu.memory_space<vmem>>, %arg8: memref<32x96xf32, #tpu.memory_space<vmem>>, %arg9: memref<1x96xf32, #tpu.memory_space<vmem>>, %arg10: memref<1x96xf32, #tpu.memory_space<vmem>>, %arg11: memref<8x4x128xf32, #tpu.memory_space<vmem>>, %arg12: memref<8x32xf32, #tpu.memory_space<vmem>>, %arg13: memref<4x8x32xf32, #tpu.memory_space<vmem>>) attributes {dimension_semantics = [#tpu.dimension_semantics<parallel>], iteration_bounds = array<i64: 1>, scalar_prefetch = 0 : i64, scratch_operands = 1 : i64, tpu.core_type = #tpu.core_type<tc>, window_params = [{transform_indices = @transform_0, window_bounds = array<i64: 8, 128, 7>}, {transform_indices = @transform_1, window_bounds = array<i64: 4, 8, 4>}, {transform_indices = @transform_2, window_bounds = array<i64: 8, 128>}, {transform_indices = @transform_3, window_bounds = array<i64: 8, 32>}, {pipeline_mode = #tpu.pipeline_mode<synchronous>, transform_indices = @transform_4, window_bounds = array<i64: 7, 32>}, {pipeline_mode = #tpu.pipeline_mode<synchronous>, transform_indices = @transform_5, window_bounds = array<i64: 1, 32>}, {pipeline_mode = #tpu.pipeline_mode<synchronous>, transform_indices = @transform_6, window_bounds = array<i64: 4, 96>}, {pipeline_mode = #tpu.pipeline_mode<synchronous>, transform_indices = @transform_7, window_bounds = array<i64: 32, 96>}, {pipeline_mode = #tpu.pipeline_mode<synchronous>, transform_indices = @transform_8, window_bounds = array<i64: 1, 96>}, {pipeline_mode = #tpu.pipeline_mode<synchronous>, transform_indices = @transform_9, window_bounds = array<i64: 1, 96>}, {transform_indices = @transform_10, window_bounds = array<i64: 8, 4, 128>}, {transform_indices = @transform_11, window_bounds = array<i64: 8, 32>}]} {
    %c0 = arith.constant 0 : index
    %c0_0 = arith.constant 0 : index
    %c0_1 = arith.constant 0 : index
    %0 = vector.load %arg1[%c0, %c0_0, %c0_1] : memref<8x128x7xf32, #tpu.memory_space<vmem>>, vector<8x128x7xf32>
    %c0_2 = arith.constant 0 : index
    %c0_3 = arith.constant 0 : index
    %1 = vector.load %arg5[%c0_2, %c0_3] : memref<7x32xf32, #tpu.memory_space<vmem>>, vector<7x32xf32>
    %cst = arith.constant dense<0.000000e+00> : vector<8x128x32xf32>
    %2 = tpu.matmul %0, %1, %cst {dimension_numbers = #tpu.dot_dimension_numbers<[2], [0], [0, 1], [1], [0, 0, 0, 1, 1, 1], [], []>} : vector<8x128x7xf32>, vector<7x32xf32>, vector<8x128x32xf32> -> vector<8x128x32xf32>
    %c0_4 = arith.constant 0 : index
    %c0_5 = arith.constant 0 : index
    %3 = vector.load %arg6[%c0_4, %c0_5] : memref<1x32xf32, #tpu.memory_space<vmem>>, vector<1x32xf32>
    %4 = vector.shape_cast %3 : vector<1x32xf32> to vector<1x1x32xf32>
    %5 = vector.broadcast %4 : vector<1x1x32xf32> to vector<8x128x32xf32>
    %6 = arith.addf %2, %5 : vector<8x128x32xf32>
    %cst_6 = arith.constant 0.000000e+00 : f32
    %7 = vector.broadcast %cst_6 : f32 to vector<8x128x32xf32>
    %8 = arith.maximumf %6, %7 : vector<8x128x32xf32>
    %c0_7 = arith.constant 0 : index
    %c0_8 = arith.constant 0 : index
    %c0_9 = arith.constant 0 : index
    %9 = vector.load %arg2[%c0_7, %c0_8, %c0_9] : memref<4x8x4xf32, #tpu.memory_space<vmem>>, vector<4x8x4xf32>
    %c0_10 = arith.constant 0 : index
    %c0_11 = arith.constant 0 : index
    %10 = vector.load %arg7[%c0_10, %c0_11] : memref<4x96xf32, #tpu.memory_space<vmem>>, vector<4x96xf32>
    %cst_12 = arith.constant dense<0.000000e+00> : vector<4x8x96xf32>
    %11 = tpu.matmul %9, %10, %cst_12 {dimension_numbers = #tpu.dot_dimension_numbers<[2], [0], [0, 1], [1], [0, 0, 0, 1, 1, 1], [], []>} : vector<4x8x4xf32>, vector<4x96xf32>, vector<4x8x96xf32> -> vector<4x8x96xf32>
    %c0_13 = arith.constant 0 : index
    %c0_14 = arith.constant 0 : index
    %12 = vector.load %arg9[%c0_13, %c0_14] : memref<1x96xf32, #tpu.memory_space<vmem>>, vector<1x96xf32>
    %13 = vector.shape_cast %12 : vector<1x96xf32> to vector<1x1x96xf32>
    %14 = vector.broadcast %13 : vector<1x1x96xf32> to vector<4x8x96xf32>
    %15 = arith.addf %11, %14 : vector<4x8x96xf32>
    %c0_15 = arith.constant 0 : index
    %c0_16 = arith.constant 0 : index
    %16 = vector.load %arg8[%c0_15, %c0_16] : memref<32x96xf32, #tpu.memory_space<vmem>>, vector<32x96xf32>
    %c0_17 = arith.constant 0 : index
    %c0_18 = arith.constant 0 : index
    %17 = vector.load %arg10[%c0_17, %c0_18] : memref<1x96xf32, #tpu.memory_space<vmem>>, vector<1x96xf32>
    %18 = vector.shape_cast %17 : vector<1x96xf32> to vector<1x96xf32>
    %19 = vector.broadcast %18 : vector<1x96xf32> to vector<8x96xf32>
    %c0_19 = arith.constant 0 : index
    %c0_20 = arith.constant 0 : index
    %20 = vector.load %arg4[%c0_19, %c0_20] : memref<8x32xf32, #tpu.memory_space<vmem>>, vector<8x32xf32>
    %21 = vector.extract_strided_slice %15 {offsets = [0, 0, 0], sizes = [1, 8, 96], strides = [1, 1, 1]} : vector<4x8x96xf32> to vector<1x8x96xf32>
    %22 = vector.shape_cast %21 : vector<1x8x96xf32> to vector<8x96xf32>
    %cst_21 = arith.constant dense<0.000000e+00> : vector<8x96xf32>
    %23 = tpu.matmul %20, %16, %cst_21 {dimension_numbers = #tpu.dot_dimension_numbers<[1], [0], [0], [1], [0, 0, 1, 1], [], []>} : vector<8x32xf32>, vector<32x96xf32>, vector<8x96xf32> -> vector<8x96xf32>
    %24 = arith.addf %23, %19 : vector<8x96xf32>
    %25 = vector.extract_strided_slice %22 {offsets = [0, 0], sizes = [8, 32], strides = [1, 1]} : vector<8x96xf32> to vector<8x32xf32>
    %26 = vector.extract_strided_slice %24 {offsets = [0, 0], sizes = [8, 32], strides = [1, 1]} : vector<8x96xf32> to vector<8x32xf32>
    %27 = arith.addf %25, %26 : vector<8x32xf32>
    %28 = arith.negf %27 : vector<8x32xf32>
    %29 = math.exp %28 : vector<8x32xf32>
    %cst_22 = arith.constant 1.000000e+00 : f32
    %30 = vector.broadcast %cst_22 : f32 to vector<8x32xf32>
    %31 = arith.addf %30, %29 : vector<8x32xf32>
    %32 = arith.divf %30, %31 : vector<8x32xf32>
    %33 = vector.extract_strided_slice %22 {offsets = [0, 32], sizes = [8, 32], strides = [1, 1]} : vector<8x96xf32> to vector<8x32xf32>
    %34 = vector.extract_strided_slice %24 {offsets = [0, 32], sizes = [8, 32], strides = [1, 1]} : vector<8x96xf32> to vector<8x32xf32>
    %35 = arith.addf %33, %34 : vector<8x32xf32>
    %36 = arith.negf %35 : vector<8x32xf32>
    %37 = math.exp %36 : vector<8x32xf32>
    %cst_23 = arith.constant 1.000000e+00 : f32
    %38 = vector.broadcast %cst_23 : f32 to vector<8x32xf32>
    %39 = arith.addf %38, %37 : vector<8x32xf32>
    %40 = arith.divf %38, %39 : vector<8x32xf32>
    %41 = vector.extract_strided_slice %22 {offsets = [0, 64], sizes = [8, 32], strides = [1, 1]} : vector<8x96xf32> to vector<8x32xf32>
    %42 = vector.extract_strided_slice %24 {offsets = [0, 64], sizes = [8, 32], strides = [1, 1]} : vector<8x96xf32> to vector<8x32xf32>
    %43 = arith.mulf %32, %42 : vector<8x32xf32>
    %44 = arith.addf %41, %43 : vector<8x32xf32>
    %45 = math.tanh %44 : vector<8x32xf32>
    %cst_24 = arith.constant 1.000000e+00 : f32
    %46 = vector.broadcast %cst_24 : f32 to vector<8x32xf32>
    %47 = arith.subf %46, %40 : vector<8x32xf32>
    %48 = arith.mulf %47, %45 : vector<8x32xf32>
    %49 = arith.mulf %40, %20 : vector<8x32xf32>
    %50 = arith.addf %48, %49 : vector<8x32xf32>
    %c0_25 = arith.constant 0 : index
    %c0_26 = arith.constant 0 : index
    %c0_27 = arith.constant 0 : index
    %51 = vector.load %arg13[%c0_25, %c0_26, %c0_27] : memref<4x8x32xf32, #tpu.memory_space<vmem>>, vector<1x8x32xf32>
    %52 = vector.shape_cast %51 : vector<1x8x32xf32> to vector<8x32xf32>
    %53 = vector.shape_cast %50 : vector<8x32xf32> to vector<1x8x32xf32>
    tpu.vector_store %arg13[%c0_25, %c0_26, %c0_27], %53 {strides = array<i32>} : memref<4x8x32xf32, #tpu.memory_space<vmem>>, vector<1x8x32xf32>,
    %54 = vector.extract_strided_slice %15 {offsets = [1, 0, 0], sizes = [1, 8, 96], strides = [1, 1, 1]} : vector<4x8x96xf32> to vector<1x8x96xf32>
    %55 = vector.shape_cast %54 : vector<1x8x96xf32> to vector<8x96xf32>
    %cst_28 = arith.constant dense<0.000000e+00> : vector<8x96xf32>
    %56 = tpu.matmul %50, %16, %cst_28 {dimension_numbers = #tpu.dot_dimension_numbers<[1], [0], [0], [1], [0, 0, 1, 1], [], []>} : vector<8x32xf32>, vector<32x96xf32>, vector<8x96xf32> -> vector<8x96xf32>
    %57 = arith.addf %56, %19 : vector<8x96xf32>
    %58 = vector.extract_strided_slice %55 {offsets = [0, 0], sizes = [8, 32], strides = [1, 1]} : vector<8x96xf32> to vector<8x32xf32>
    %59 = vector.extract_strided_slice %57 {offsets = [0, 0], sizes = [8, 32], strides = [1, 1]} : vector<8x96xf32> to vector<8x32xf32>
    %60 = arith.addf %58, %59 : vector<8x32xf32>
    %61 = arith.negf %60 : vector<8x32xf32>
    %62 = math.exp %61 : vector<8x32xf32>
    %cst_29 = arith.constant 1.000000e+00 : f32
    %63 = vector.broadcast %cst_29 : f32 to vector<8x32xf32>
    %64 = arith.addf %63, %62 : vector<8x32xf32>
    %65 = arith.divf %63, %64 : vector<8x32xf32>
    %66 = vector.extract_strided_slice %55 {offsets = [0, 32], sizes = [8, 32], strides = [1, 1]} : vector<8x96xf32> to vector<8x32xf32>
    %67 = vector.extract_strided_slice %57 {offsets = [0, 32], sizes = [8, 32], strides = [1, 1]} : vector<8x96xf32> to vector<8x32xf32>
    %68 = arith.addf %66, %67 : vector<8x32xf32>
    %69 = arith.negf %68 : vector<8x32xf32>
    %70 = math.exp %69 : vector<8x32xf32>
    %cst_30 = arith.constant 1.000000e+00 : f32
    %71 = vector.broadcast %cst_30 : f32 to vector<8x32xf32>
    %72 = arith.addf %71, %70 : vector<8x32xf32>
    %73 = arith.divf %71, %72 : vector<8x32xf32>
    %74 = vector.extract_strided_slice %55 {offsets = [0, 64], sizes = [8, 32], strides = [1, 1]} : vector<8x96xf32> to vector<8x32xf32>
    %75 = vector.extract_strided_slice %57 {offsets = [0, 64], sizes = [8, 32], strides = [1, 1]} : vector<8x96xf32> to vector<8x32xf32>
    %76 = arith.mulf %65, %75 : vector<8x32xf32>
    %77 = arith.addf %74, %76 : vector<8x32xf32>
    %78 = math.tanh %77 : vector<8x32xf32>
    %cst_31 = arith.constant 1.000000e+00 : f32
    %79 = vector.broadcast %cst_31 : f32 to vector<8x32xf32>
    %80 = arith.subf %79, %73 : vector<8x32xf32>
    %81 = arith.mulf %80, %78 : vector<8x32xf32>
    %82 = arith.mulf %73, %50 : vector<8x32xf32>
    %83 = arith.addf %81, %82 : vector<8x32xf32>
    %c1 = arith.constant 1 : index
    %c0_32 = arith.constant 0 : index
    %c0_33 = arith.constant 0 : index
    %84 = vector.load %arg13[%c1, %c0_32, %c0_33] : memref<4x8x32xf32, #tpu.memory_space<vmem>>, vector<1x8x32xf32>
    %85 = vector.shape_cast %84 : vector<1x8x32xf32> to vector<8x32xf32>
    %86 = vector.shape_cast %83 : vector<8x32xf32> to vector<1x8x32xf32>
    tpu.vector_store %arg13[%c1, %c0_32, %c0_33], %86 {strides = array<i32>} : memref<4x8x32xf32, #tpu.memory_space<vmem>>, vector<1x8x32xf32>,
    %87 = vector.extract_strided_slice %15 {offsets = [2, 0, 0], sizes = [1, 8, 96], strides = [1, 1, 1]} : vector<4x8x96xf32> to vector<1x8x96xf32>
    %88 = vector.shape_cast %87 : vector<1x8x96xf32> to vector<8x96xf32>
    %cst_34 = arith.constant dense<0.000000e+00> : vector<8x96xf32>
    %89 = tpu.matmul %83, %16, %cst_34 {dimension_numbers = #tpu.dot_dimension_numbers<[1], [0], [0], [1], [0, 0, 1, 1], [], []>} : vector<8x32xf32>, vector<32x96xf32>, vector<8x96xf32> -> vector<8x96xf32>
    %90 = arith.addf %89, %19 : vector<8x96xf32>
    %91 = vector.extract_strided_slice %88 {offsets = [0, 0], sizes = [8, 32], strides = [1, 1]} : vector<8x96xf32> to vector<8x32xf32>
    %92 = vector.extract_strided_slice %90 {offsets = [0, 0], sizes = [8, 32], strides = [1, 1]} : vector<8x96xf32> to vector<8x32xf32>
    %93 = arith.addf %91, %92 : vector<8x32xf32>
    %94 = arith.negf %93 : vector<8x32xf32>
    %95 = math.exp %94 : vector<8x32xf32>
    %cst_35 = arith.constant 1.000000e+00 : f32
    %96 = vector.broadcast %cst_35 : f32 to vector<8x32xf32>
    %97 = arith.addf %96, %95 : vector<8x32xf32>
    %98 = arith.divf %96, %97 : vector<8x32xf32>
    %99 = vector.extract_strided_slice %88 {offsets = [0, 32], sizes = [8, 32], strides = [1, 1]} : vector<8x96xf32> to vector<8x32xf32>
    %100 = vector.extract_strided_slice %90 {offsets = [0, 32], sizes = [8, 32], strides = [1, 1]} : vector<8x96xf32> to vector<8x32xf32>
    %101 = arith.addf %99, %100 : vector<8x32xf32>
    %102 = arith.negf %101 : vector<8x32xf32>
    %103 = math.exp %102 : vector<8x32xf32>
    %cst_36 = arith.constant 1.000000e+00 : f32
    %104 = vector.broadcast %cst_36 : f32 to vector<8x32xf32>
    %105 = arith.addf %104, %103 : vector<8x32xf32>
    %106 = arith.divf %104, %105 : vector<8x32xf32>
    %107 = vector.extract_strided_slice %88 {offsets = [0, 64], sizes = [8, 32], strides = [1, 1]} : vector<8x96xf32> to vector<8x32xf32>
    %108 = vector.extract_strided_slice %90 {offsets = [0, 64], sizes = [8, 32], strides = [1, 1]} : vector<8x96xf32> to vector<8x32xf32>
    %109 = arith.mulf %98, %108 : vector<8x32xf32>
    %110 = arith.addf %107, %109 : vector<8x32xf32>
    %111 = math.tanh %110 : vector<8x32xf32>
    %cst_37 = arith.constant 1.000000e+00 : f32
    %112 = vector.broadcast %cst_37 : f32 to vector<8x32xf32>
    %113 = arith.subf %112, %106 : vector<8x32xf32>
    %114 = arith.mulf %113, %111 : vector<8x32xf32>
    %115 = arith.mulf %106, %83 : vector<8x32xf32>
    %116 = arith.addf %114, %115 : vector<8x32xf32>
    %c2 = arith.constant 2 : index
    %c0_38 = arith.constant 0 : index
    %c0_39 = arith.constant 0 : index
    %117 = vector.load %arg13[%c2, %c0_38, %c0_39] : memref<4x8x32xf32, #tpu.memory_space<vmem>>, vector<1x8x32xf32>
    %118 = vector.shape_cast %117 : vector<1x8x32xf32> to vector<8x32xf32>
    %119 = vector.shape_cast %116 : vector<8x32xf32> to vector<1x8x32xf32>
    tpu.vector_store %arg13[%c2, %c0_38, %c0_39], %119 {strides = array<i32>} : memref<4x8x32xf32, #tpu.memory_space<vmem>>, vector<1x8x32xf32>,
    %120 = vector.extract_strided_slice %15 {offsets = [3, 0, 0], sizes = [1, 8, 96], strides = [1, 1, 1]} : vector<4x8x96xf32> to vector<1x8x96xf32>
    %121 = vector.shape_cast %120 : vector<1x8x96xf32> to vector<8x96xf32>
    %cst_40 = arith.constant dense<0.000000e+00> : vector<8x96xf32>
    %122 = tpu.matmul %116, %16, %cst_40 {dimension_numbers = #tpu.dot_dimension_numbers<[1], [0], [0], [1], [0, 0, 1, 1], [], []>} : vector<8x32xf32>, vector<32x96xf32>, vector<8x96xf32> -> vector<8x96xf32>
    %123 = arith.addf %122, %19 : vector<8x96xf32>
    %124 = vector.extract_strided_slice %121 {offsets = [0, 0], sizes = [8, 32], strides = [1, 1]} : vector<8x96xf32> to vector<8x32xf32>
    %125 = vector.extract_strided_slice %123 {offsets = [0, 0], sizes = [8, 32], strides = [1, 1]} : vector<8x96xf32> to vector<8x32xf32>
    %126 = arith.addf %124, %125 : vector<8x32xf32>
    %127 = arith.negf %126 : vector<8x32xf32>
    %128 = math.exp %127 : vector<8x32xf32>
    %cst_41 = arith.constant 1.000000e+00 : f32
    %129 = vector.broadcast %cst_41 : f32 to vector<8x32xf32>
    %130 = arith.addf %129, %128 : vector<8x32xf32>
    %131 = arith.divf %129, %130 : vector<8x32xf32>
    %132 = vector.extract_strided_slice %121 {offsets = [0, 32], sizes = [8, 32], strides = [1, 1]} : vector<8x96xf32> to vector<8x32xf32>
    %133 = vector.extract_strided_slice %123 {offsets = [0, 32], sizes = [8, 32], strides = [1, 1]} : vector<8x96xf32> to vector<8x32xf32>
    %134 = arith.addf %132, %133 : vector<8x32xf32>
    %135 = arith.negf %134 : vector<8x32xf32>
    %136 = math.exp %135 : vector<8x32xf32>
    %cst_42 = arith.constant 1.000000e+00 : f32
    %137 = vector.broadcast %cst_42 : f32 to vector<8x32xf32>
    %138 = arith.addf %137, %136 : vector<8x32xf32>
    %139 = arith.divf %137, %138 : vector<8x32xf32>
    %140 = vector.extract_strided_slice %121 {offsets = [0, 64], sizes = [8, 32], strides = [1, 1]} : vector<8x96xf32> to vector<8x32xf32>
    %141 = vector.extract_strided_slice %123 {offsets = [0, 64], sizes = [8, 32], strides = [1, 1]} : vector<8x96xf32> to vector<8x32xf32>
    %142 = arith.mulf %131, %141 : vector<8x32xf32>
    %143 = arith.addf %140, %142 : vector<8x32xf32>
    %144 = math.tanh %143 : vector<8x32xf32>
    %cst_43 = arith.constant 1.000000e+00 : f32
    %145 = vector.broadcast %cst_43 : f32 to vector<8x32xf32>
    %146 = arith.subf %145, %139 : vector<8x32xf32>
    %147 = arith.mulf %146, %144 : vector<8x32xf32>
    %148 = arith.mulf %139, %116 : vector<8x32xf32>
    %149 = arith.addf %147, %148 : vector<8x32xf32>
    %c3 = arith.constant 3 : index
    %c0_44 = arith.constant 0 : index
    %c0_45 = arith.constant 0 : index
    %150 = vector.load %arg13[%c3, %c0_44, %c0_45] : memref<4x8x32xf32, #tpu.memory_space<vmem>>, vector<1x8x32xf32>
    %151 = vector.shape_cast %150 : vector<1x8x32xf32> to vector<8x32xf32>
    %152 = vector.shape_cast %149 : vector<8x32xf32> to vector<1x8x32xf32>
    tpu.vector_store %arg13[%c3, %c0_44, %c0_45], %152 {strides = array<i32>} : memref<4x8x32xf32, #tpu.memory_space<vmem>>, vector<1x8x32xf32>,
    %c0_46 = arith.constant 0 : index
    %c0_47 = arith.constant 0 : index
    %153 = vector.load %arg12[%c0_46, %c0_47] : memref<8x32xf32, #tpu.memory_space<vmem>>, vector<8x32xf32>
    tpu.vector_store %arg12[%c0_46, %c0_47], %149 {strides = array<i32>} : memref<8x32xf32, #tpu.memory_space<vmem>>, vector<8x32xf32>,
    %c0_48 = arith.constant 0 : index
    %c0_49 = arith.constant 0 : index
    %c0_50 = arith.constant 0 : index
    %154 = vector.load %arg13[%c0_48, %c0_49, %c0_50] : memref<4x8x32xf32, #tpu.memory_space<vmem>>, vector<4x8x32xf32>
    %cst_51 = arith.constant dense<0.000000e+00> : vector<8x4x128xf32>
    %155 = tpu.matmul %154, %8, %cst_51 {dimension_numbers = #tpu.dot_dimension_numbers<[2], [2], [0], [1], [0, 1, 0, 0, 1, 1], [1], [0]>} : vector<4x8x32xf32>, vector<8x128x32xf32>, vector<8x4x128xf32> -> vector<8x4x128xf32>
    %c0_52 = arith.constant 0 : index
    %c0_53 = arith.constant 0 : index
    %156 = vector.load %arg3[%c0_52, %c0_53] : memref<8x128xf32, #tpu.memory_space<vmem>>, vector<8x128xf32>
    %cst_54 = arith.constant 0.000000e+00 : f32
    %157 = vector.broadcast %cst_54 : f32 to vector<8x128xf32>
    %158 = arith.cmpf ogt, %156, %157 : vector<8x128xf32>
    %159 = vector.shape_cast %158 : vector<8x128xi1> to vector<8x1x128xi1>
    %cst_55 = arith.constant -1.000000e+09 : f32
    %160 = vector.shape_cast %159 : vector<8x1x128xi1> to vector<8x1x128xi1>
    %161 = vector.broadcast %160 : vector<8x1x128xi1> to vector<8x4x128xi1>
    %162 = vector.broadcast %cst_55 : f32 to vector<8x4x128xf32>
    %163 = arith.select %161, %155, %162 : vector<8x4x128xi1>, vector<8x4x128xf32>
    %cst_56 = arith.constant dense<0xFF800000> : vector<8x4xf32>
    %164 = vector.multi_reduction <maximumf>, %163, %cst_56 [2] : vector<8x4x128xf32> to vector<8x4xf32>
    %165 = vector.shape_cast %164 : vector<8x4xf32> to vector<8x4x1xf32>
    %166 = vector.broadcast %165 : vector<8x4x1xf32> to vector<8x4x128xf32>
    %167 = arith.subf %163, %166 : vector<8x4x128xf32>
    %168 = math.exp %167 : vector<8x4x128xf32>
    %cst_57 = arith.constant dense<0.000000e+00> : vector<8x4xf32>
    %169 = vector.multi_reduction <add>, %168, %cst_57 [2] : vector<8x4x128xf32> to vector<8x4xf32>
    %170 = vector.shape_cast %169 : vector<8x4xf32> to vector<8x4x1xf32>
    %171 = vector.broadcast %170 : vector<8x4x1xf32> to vector<8x4x128xf32>
    %172 = arith.divf %168, %171 : vector<8x4x128xf32>
    %cst_58 = arith.constant 1.000000e-10 : f32
    %173 = vector.broadcast %cst_58 : f32 to vector<8x4x128xf32>
    %174 = arith.addf %172, %173 : vector<8x4x128xf32>
    %175 = math.log %174 : vector<8x4x128xf32>
    %c0_59 = arith.constant 0 : index
    %c0_60 = arith.constant 0 : index
    %c0_61 = arith.constant 0 : index
    %176 = vector.load %arg11[%c0_59, %c0_60, %c0_61] : memref<8x4x128xf32, #tpu.memory_space<vmem>>, vector<8x4x128xf32>
    tpu.vector_store %arg11[%c0_59, %c0_60, %c0_61], %175 {strides = array<i32>} : memref<8x4x128xf32, #tpu.memory_space<vmem>>, vector<8x4x128xf32>,
    return
  }
  func.func @transform_0(%arg0: i32) -> (i32, i32, i32) {
    %c0_i32 = arith.constant 0 : i32
    %c0_i32_0 = arith.constant 0 : i32
    %c0_i32_1 = arith.constant 0 : i32
    return %arg0, %c0_i32, %c0_i32_0 : i32, i32, i32
  }
  func.func @transform_1(%arg0: i32) -> (i32, i32, i32) {
    %c0_i32 = arith.constant 0 : i32
    %c0_i32_0 = arith.constant 0 : i32
    %c0_i32_1 = arith.constant 0 : i32
    return %c0_i32, %arg0, %c0_i32_0 : i32, i32, i32
  }
  func.func @transform_2(%arg0: i32) -> (i32, i32) {
    %c0_i32 = arith.constant 0 : i32
    %c0_i32_0 = arith.constant 0 : i32
    return %arg0, %c0_i32 : i32, i32
  }
  func.func @transform_3(%arg0: i32) -> (i32, i32) {
    %c0_i32 = arith.constant 0 : i32
    %c0_i32_0 = arith.constant 0 : i32
    return %arg0, %c0_i32 : i32, i32
  }
  func.func @transform_4(%arg0: i32) -> (i32, i32) {
    %c0_i32 = arith.constant 0 : i32
    %c0_i32_0 = arith.constant 0 : i32
    %c0_i32_1 = arith.constant 0 : i32
    return %c0_i32, %c0_i32_0 : i32, i32
  }
  func.func @transform_5(%arg0: i32) -> (i32, i32) {
    %c0_i32 = arith.constant 0 : i32
    %c0_i32_0 = arith.constant 0 : i32
    %c0_i32_1 = arith.constant 0 : i32
    return %c0_i32, %c0_i32_0 : i32, i32
  }
  func.func @transform_6(%arg0: i32) -> (i32, i32) {
    %c0_i32 = arith.constant 0 : i32
    %c0_i32_0 = arith.constant 0 : i32
    %c0_i32_1 = arith.constant 0 : i32
    return %c0_i32, %c0_i32_0 : i32, i32
  }
  func.func @transform_7(%arg0: i32) -> (i32, i32) {
    %c0_i32 = arith.constant 0 : i32
    %c0_i32_0 = arith.constant 0 : i32
    %c0_i32_1 = arith.constant 0 : i32
    return %c0_i32, %c0_i32_0 : i32, i32
  }
  func.func @transform_8(%arg0: i32) -> (i32, i32) {
    %c0_i32 = arith.constant 0 : i32
    %c0_i32_0 = arith.constant 0 : i32
    %c0_i32_1 = arith.constant 0 : i32
    return %c0_i32, %c0_i32_0 : i32, i32
  }
  func.func @transform_9(%arg0: i32) -> (i32, i32) {
    %c0_i32 = arith.constant 0 : i32
    %c0_i32_0 = arith.constant 0 : i32
    %c0_i32_1 = arith.constant 0 : i32
    return %c0_i32, %c0_i32_0 : i32, i32
  }
  func.func @transform_10(%arg0: i32) -> (i32, i32, i32) {
    %c0_i32 = arith.constant 0 : i32
    %c0_i32_0 = arith.constant 0 : i32
    %c0_i32_1 = arith.constant 0 : i32
    return %arg0, %c0_i32, %c0_i32_0 : i32, i32, i32
  }
  func.func @transform_11(%arg0: i32) -> (i32, i32) {
    %c0_i32 = arith.constant 0 : i32
    %c0_i32_0 = arith.constant 0 : i32
    return %arg0, %c0_i32 : i32, i32
  }
}

</mosaic_0001>

<bundles_post_ra>
// kernel: tpu_custom_call.1
= control target key start
LH: loop header
LB: loop body
LE: loop exit
PB: predicated region body
PF: predicated region fallthrough
CT: control target
= control target key end

     0   :  { %17 = vsyncpa [#allocation4], 0  ;;  %vm560_vm0 = vcmask 1046528   ;;  %vm175_vm1 = vcmask 56320   ;;  %vm1422_vm2 = vcmask 1043456   ;;  %v6120_v7 = vmov 0.0|0.0   ;;  %s6108_s0 = inlined_call_operand.vmem [shape: f32[8,128,7], index: 0, kind: input, shape index: {}]   ;;  %s6109_s1 = inlined_call_operand.vmem [shape: f32[4,8,4], index: 1, kind: input, shape index: {}]   ;;  %s6110_s2 = inlined_call_operand.vmem [shape: f32[8,128], index: 2, kind: input, shape index: {}]   ;;  %s6111_s3 = inlined_call_operand.vmem [shape: f32[8,32], index: 3, kind: input, shape index: {}]   ;;  %s6112_s4 = inlined_call_operand.vmem [shape: f32[7,32], index: 4, kind: input, shape index: {}]   ;;  %s6113_s5 = inlined_call_operand.vmem [shape: f32[1,32], index: 5, kind: input, shape index: {}]   ;;  %s6114_s6 = inlined_call_operand.vmem [shape: f32[4,96], index: 6, kind: input, shape index: {}]   ;;  %s6115_s7 = inlined_call_operand.vmem [shape: f32[32,96], index: 7, kind: input, shape index: {}]   ;;  %s6116_s8 = inlined_call_operand.vmem [shape: f32[1,96], index: 8, kind: input, shape index: {}]   ;;  %s6117_s9 = inlined_call_operand.vmem [shape: f32[1,96], index: 9, kind: input, shape index: {}]   ;;  %s6118_s10 = inlined_call_operand.hbm [shape: f32[8,4,128], index: 10, kind: output, shape index: {0}]   ;;  %s6119_s11 = inlined_call_operand.hbm [shape: f32[8,32], index: 11, kind: output, shape index: {1}]  }
   0x1   :  { %v167_v0 = vld [vmem:[%s6112_s4] sm:$0x7f]  ;;  %v160_v2 = vld [vmem:[%s6108_s0 + $0x3c8] sm:$0xff]  ;;  %v161_v4 = vld [vmem:[%s6108_s0 + $0x3d0] sm:$0xff] }
   0x2   :  { %v159_v1 = vld [vmem:[%s6108_s0 + $0x3c0] sm:$0xff]  ;;  %4627 = vmatprep.subr.msk.mxu1 %vm560_vm0, %v167_v0  ;;  %3821 = vmatprep.subr.msk.mxu0 %vm560_vm0, %v167_v0  ;;  %v162_v5 = vld [vmem:[%s6108_s0 + $0x3d8] sm:$0xff] }
   0x3   :  { %4003 = vmatprep.mubr.msk.f32.mxu1 %vm175_vm1, %v159_v1  ;;  %v1401_v3 = vld [vmem:[%s6114_s6] sm:$0xf]  ;;  %4628 = vmatpush3.msk.msra.mxu1 %vm560_vm0, %v167_v0 }
   0x4   :  { %4004 = vmatmul.mubr.msk.f32.vlgmr.msra.gmra.mrb[0].mxu1 %vm175_vm1, %v160_v2  ;;  %4015 = vmatprep.subr.msk.mxu1 %vm1422_vm2, %v1401_v3  ;;  %v163_v6 = vld [vmem:[%s6108_s0 + $0x3e0] sm:$0xff] }
   0x5   :  { %4016 = vmatpush3.msk.msra.mxu1 %vm1422_vm2, %v1401_v3  ;;  %4006 = vmatprep.mubr.msk.f32.mxu1 %vm175_vm1, %v161_v4 }
   0x6   :  { %4347 = vmatprep.subr.bf16.mxu1 %v6120_v7  ;;  %3822 = vmatpush3.msk.msra.mxu0 %vm560_vm0, %v167_v0 }
   0x7   :  { %4467 = vmatprep.subr.bf16.mxu0 %v6120_v7 }
   0x8   :  { %4007 = vmatmul.mubr.msk.f32.gmra.mrb[2].mxu1 %vm175_vm1, %v162_v5 }
   0x9   :  { %18 = vsyncpa [#allocation6], 0  ;;  %4009 = vmatprep.mubr.msk.f32.mxu1 %vm175_vm1, %v163_v6  ;;  %v164_v8 = vld [vmem:[%s6108_s0 + $0x3e8] sm:$0xff]  ;;  %v165_v9 = vld [vmem:[%s6108_s0 + $0x3f0] sm:$0xff]  ;;  %vm1409_vm3 = vcmask 31744   ;;  %vm4770_vm4 = vmmov 0  }
   0xa   :  { %v166_v10 = vld [vmem:[%s6108_s0 + $0x3f8] sm:$0xff]  ;;  %v1397_v11 = vld [vmem:[%s6109_s1] sm:$0xff]  ;;  %v1512_v13 = vld [vmem:[%s6115_s7 + $0x8] sm:$0xff]  ;;  %v6122_v21 = vmov 0.0   ;;  %vm1523_vm5 = vcmask 261120   ;;  %s4774_s16 = smov 32  }
   0xb   :  { %v1511_v12 = vld [vmem:[%s6115_s7] sm:$0xff]  ;;  %v1398_v14 = vld [vmem:[%s6109_s1 + $0x8] sm:$0xff]  ;;  %v1399_v16 = vld [vmem:[%s6109_s1 + $0x10] sm:$0xff] }
   0xc   :  { %4010 = vmatmul.mubr.msk.f32.gmra.mrb[4].mxu1 %vm175_vm1, %v164_v8  ;;  %v4901_v15 = vpack.c.bf16 %v1512_v13, %v1511_v12  ;;  %v1513_v17 = vld [vmem:[%s6115_s7 + $0x10] sm:$0xff]  ;;  %v1514_v18 = vld [vmem:[%s6115_s7 + $0x18] sm:$0xff]  ;;  %v4928_v22 = vld [vmem:[%s6111_s3] sm:$0xff] }
   0xd   :  { %4012 = vmatprep.mubr.msk.f32.mxu1 %vm175_vm1, %v165_v9  ;;  %v1400_v19 = vld [vmem:[%s6109_s1 + $0x18] sm:$0xff]  ;;  %v4918_v20 = vpack.c.bf16 %v1514_v18, %v1513_v17  ;;  %v4942_v23 = vld [vmem:[%s6113_s5] ss:$0 sm:$0xff]  ;;  %vm5301_vm6 = vmpackc.low %vm1523_vm5, %vm1523_vm5 }
   0xe   :  { %v3380_v49 = vld [vmem:[%s6116_s8] ss:$0 sm:$0xff]  ;;  %s4772_s8 = smov 64  }
   0xf   :  { %v4970_v60 = vld [vmem:[%s6117_s9] ss:$0 sm:$0xff]  ;;  %s4773_s9 = smov 96  }
  0x10   :  { %4013 = vmatmul.mubr.msk.f32.gmra.mrb[6].mxu1 %vm175_vm1, %v166_v10 }
  0x11   :  { %4017 = vmatprep.mubr.msk.f32.mxu1 %vm1409_vm3, %v1397_v11 }
  0x14   :  { %4018 = vmatmul.mubr.msk.f32.vlgmr.msra.gmra.mrb[8].mxu1 %vm1409_vm3, %v1398_v14 }
  0x15   :  { %4349 = vmatpush3.bf16.msra.mxu1 %v4901_v15  ;;  %4020 = vmatprep.mubr.msk.f32.mxu1 %vm1409_vm3, %v1399_v16 }
  0x16   :  { %4350 = vmatprep.subr.bf16.mxu1 %v6120_v7 }
  0x18   :  { %4021 = vmatmul.mubr.msk.f32.gmra.mrb[10].mxu1 %vm1409_vm3, %v1400_v19 }
  0x19   :  { %4352 = vmatpush3.bf16.msra.mxu1 %v4918_v20  ;;  %4031 = vmatprep.mubr.msk.f32.mxu1 %vm4770_vm4, %v6122_v21 }
  0x1a   :  { %4353 = vmatprep.subr.bf16.mxu1 %v6120_v7 }
  0x1c   :  { %4032 = vmatmul.mubr.msk.f32.vlgmr.msra.gmra.mrb[12].mxu1 %vm1523_vm5, %v4928_v22 }
  0x1d   :  { %4355 = vmatpush3.bf16.msra.mxu1 %v4901_v15  ;;  %4042 = vmatprep.mubr.msk.f32.mxu1 %vm4770_vm4, %v6122_v21 }
  0x1e   :  { %4356 = vmatprep.subr.bf16.mxu1 %v6120_v7 }
  0x21   :  { %4358 = vmatpush3.bf16.msra.mxu1 %v4918_v20 }
  0x22   :  { %4359 = vmatprep.subr.bf16.mxu1 %v6120_v7 }
  0xd7   :  { %v4005_v24 = vpop.f32.mrb[0].mxu1 }
  0xd8   :  { %v1236_v25 = vadd.f32 %v4005_v24, %v4942_v23  ;;  %v1230_v26 = vpop.f32.mrb[1].mxu1 }
  0xd9   :  { %v1231_v27 = vadd.f32 %v4942_v23, %v1230_v26 }
  0xda   :  { %v1390_v28 = vmax.f32 %v1236_v25, 0.0 }
  0xdb   :  { %v1389_v29 = vmax.f32 %v1231_v27, 0.0  ;;  %v4008_v30 = vpop.f32.mrb[2].mxu1 }
  0xdc   :  { %v1246_v31 = vadd.f32 %v4008_v30, %v4942_v23  ;;  %v1240_v32 = vpop.f32.mrb[3].mxu1 }
  0xdd   :  { %v4947_v33 = vpack.c.bf16 %v1390_v28, %v1389_v29  ;;  %v1241_v34 = vadd.f32 %v4942_v23, %v1240_v32 }
  0xde   :  { %v1392_v35 = vmax.f32 %v1246_v31, 0.0 }
  0xdf   :  { %v1391_v36 = vmax.f32 %v1241_v34, 0.0  ;;  %v4011_v37 = vpop.f32.mrb[4].mxu1 }
  0xe0   :  { %v1256_v38 = vadd.f32 %v4011_v37, %v4942_v23  ;;  %v1250_v39 = vpop.f32.mrb[5].mxu1 }
  0xe1   :  { %v4951_v40 = vpack.c.bf16 %v1392_v35, %v1391_v36  ;;  %v1251_v41 = vadd.f32 %v4942_v23, %v1250_v39 }
  0xe2   :  { %v1394_v42 = vmax.f32 %v1256_v38, 0.0 }
  0xe3   :  { %v1393_v43 = vmax.f32 %v1251_v41, 0.0  ;;  %v4014_v44 = vpop.f32.mrb[6].mxu1 }
  0xe4   :  { %v1266_v45 = vadd.f32 %v4014_v44, %v4942_v23  ;;  %v1260_v46 = vpop.f32.mrb[7].mxu1 }
  0xe5   :  { %v4955_v47 = vpack.c.bf16 %v1394_v42, %v1393_v43  ;;  %v1261_v48 = vadd.f32 %v4942_v23, %v1260_v46 }
  0xe6   :  { %v1396_v50 = vmax.f32 %v1266_v45, 0.0 }
  0xe7   :  { %v1395_v51 = vmax.f32 %v1261_v48, 0.0  ;;  %v4019_v52 = vpop.f32.mrb[8].mxu1 }
  0xe8   :  { %v1498_v53 = vadd.f32 %v4019_v52, %v3380_v49  ;;  %v1492_v54 = vpop.f32.mrb[9].mxu1 }
  0xe9   :  { %v4961_v55 = vpack.c.bf16 %v1396_v50, %v1395_v51  ;;  %v1493_v0 = vadd.f32 %v3380_v49, %v1492_v54 }
  0xeb   :  { %v4022_v56 = vpop.f32.mrb[10].mxu1 }
  0xec   :  { %v4963_v57 = vadd.f32 %v4022_v56, %v3380_v49  ;;  %v1502_v58 = vpop.f32.mrb[11].mxu1 }
  0xed   :  { %v4965_v59 = vadd.f32 %v3380_v49, %v1502_v58 }
  0xef   :  { %v1593_v61 = vpop.f32.mrb[12].mxu1 }
  0xf0   :  { %v1594_v62 = vadd.f32 %v4970_v60, %v1593_v61  ;;  %v4033_v63 = vpop.f32.mrb[13].mxu1 }
  0xf2   :  { %1605 = vrot.lane.b32.xlu0 %v1594_v62, %s4772_s8  ;;  %v1597_v1 = vadd.f32 %v1594_v62, %v1493_v0 }
  0xf4   :  { %v3388_v2 = vmul.f32 -1.442695, %v1597_v1 }
  0xf6   :  { %4648 = vpow2.f32 %v3388_v2  ;;  %v40_v2 = vld [vmem:[%s6108_s0 + $0x8] sm:$0xff] }
 0x100   :  { %v4649_v3 = vpop.eup %4648 }
 0x101   :  { %v1601_v4 = vadd.f32 1.0, %v4649_v3  ;;  %v41_v3 = vld [vmem:[%s6108_s0 + $0x10] sm:$0xff] }
 0x103   :  { %4650 = vrcp.f32 %v1601_v4  ;;  %v42_v4 = vld [vmem:[%s6108_s0 + $0x18] sm:$0xff] }
 0x10d   :  { %v4651_v5 = vpop.eup %4650 }
 0x10e   :  { %v1615_v13 = vsub.f32 1.0, %v4651_v5 }
 0x164   :  { %v1606_v6 = vpop.permute.xlu0 %1605 }
 0x165   :  { %v1608_v8 = vmul.f32 %v4651_v5, %v1606_v6  ;;  %v44_v6 = vld [vmem:[%s6108_s0 + $0x28] sm:$0xff] }
 0x167   :  { %1610 = vrot.lane.b32.xlu0 %v1608_v8, %s4772_s8  ;;  %v45_v8 = vld [vmem:[%s6108_s0 + $0x30] sm:$0xff] }
 0x1d9   :  { %v1611_v9 = vpop.permute.xlu0 %1610 }
 0x1da   :  { %v1613_v10 = vadd.f32 %v1611_v9, %v1493_v0  ;;  %v46_v9 = vld [vmem:[%s6108_s0 + $0x38] sm:$0xff] }
 0x1dc   :  { %4652 = vtanh.f32 %v1613_v10  ;;  %v47_v10 = vld [vmem:[%s6108_s0 + $0x40] sm:$0xff] }
 0x1e6   :  { %v4653_v11 = vpop.eup %4652 }
 0x1e7   :  { %1617 = vrot.lane.b32.xlu1 %v4653_v11, %s4773_s9  ;;  %v48_v11 = vld [vmem:[%s6108_s0 + $0x48] sm:$0xff] }
 0x1eb   :  { %1621 = vrot.lane.b32.xlu1 %v4928_v22, %s4774_s16 }
 0x259   :  { %v1618_v12 = vpop.permute.xlu1 %1617 }
 0x25a   :  { %v1620_v16 = vmul.f32 %v1618_v12, %v1615_v13  ;;  %v49_v12 = vld [vmem:[%s6108_s0 + $0x50] sm:$0xff]  ;;  %v50_v13 = vld [vmem:[%s6108_s0 + $0x58] sm:$0xff] }
 0x25d   :  { %v1622_v14 = vpop.permute.xlu1 %1621 }
 0x25e   :  { %v1624_v17 = vmul.f32 %v4651_v5, %v1622_v14  ;;  %v43_v5 = vld [vmem:[%s6108_s0 + $0x20] sm:$0xff] }
 0x25f   :  { %v51_v14 = vld [vmem:[%s6108_s0 + $0x60] sm:$0xff] }
 0x260   :  { %v1625_v18 = vadd.f32 %v1624_v17, %v1620_v16  ;;  %v52_v16 = vld [vmem:[%s6108_s0 + $0x68] sm:$0xff]  ;;  %v53_v17 = vld [vmem:[%s6108_s0 + $0x70] sm:$0xff] }
 0x262   :  { %1627 = vrot.lane.b32.xlu0 %v1625_v18, %s4773_s9 }
 0x2d4   :  { %v1628_v19 = vpop.permute.xlu0 %1627 }
 0x2d5   :  { %1630 = vst.msk [vmem:[#allocation2] sm:$0xff] %vm1523_vm5, %v1628_v19  ;;  %4043 = vmatmul.mubr.msk.f32.vlgmr.msra.gmra.mrb[14].mxu1 %vm1523_vm5, %v1628_v19  ;;  %v55_v19 = vld [vmem:[%s6108_s0 + $0x80] sm:$0xff] }
 0x2d6   :  { %4361 = vmatpush3.bf16.msra.mxu1 %v4901_v15  ;;  %4053 = vmatprep.mubr.msk.f32.mxu1 %vm4770_vm4, %v6122_v21 }
 0x2d7   :  { %4362 = vmatprep.subr.bf16.mxu1 %v6120_v7 }
 0x2da   :  { %4364 = vmatpush3.bf16.msra.mxu1 %v4918_v20 }
 0x2db   :  { %4365 = vmatprep.subr.bf16.mxu1 %v6120_v7 }
 0x3a8   :  { %v1699_v22 = vpop.f32.mrb[14].mxu1 }
 0x3a9   :  { %v1700_v24 = vadd.f32 %v4970_v60, %v1699_v22  ;;  %v4044_v25 = vpop.f32.mrb[15].mxu1  ;;  %v56_v22 = vld [vmem:[%s6108_s0 + $0x88] sm:$0xff] }
 0x3aa   :  { %v58_v25 = vld [vmem:[%s6108_s0 + $0x98] sm:$0xff] }
 0x3ab   :  { %1711 = vrot.lane.b32.xlu1 %v1700_v24, %s4772_s8  ;;  %v1703_v26 = vadd.f32 %v1700_v24, %v1498_v53  ;;  %v57_v24 = vld [vmem:[%s6108_s0 + $0x90] sm:$0xff] }
 0x3ad   :  { %v3390_v27 = vmul.f32 -1.442695, %v1703_v26  ;;  %v59_v26 = vld [vmem:[%s6108_s0 + $0xa0] sm:$0xff] }
 0x3af   :  { %4654 = vpow2.f32 %v3390_v27  ;;  %v60_v27 = vld [vmem:[%s6108_s0 + $0xa8] sm:$0xff] }
 0x3b9   :  { %v4655_v28 = vpop.eup %4654 }
 0x3ba   :  { %v1707_v29 = vadd.f32 1.0, %v4655_v28  ;;  %v61_v28 = vld [vmem:[%s6108_s0 + $0xb0] sm:$0xff] }
 0x3bc   :  { %4656 = vrcp.f32 %v1707_v29  ;;  %v62_v29 = vld [vmem:[%s6108_s0 + $0xb8] sm:$0xff] }
 0x3c6   :  { %v4657_v30 = vpop.eup %4656 }
 0x3c7   :  { %v1721_v37 = vsub.f32 1.0, %v4657_v30  ;;  %v1727_v39 = vmul.f32 %v4657_v30, %v1625_v18  ;;  %v54_v18 = vld [vmem:[%s6108_s0 + $0x78] sm:$0xff] }
 0x41d   :  { %v1712_v31 = vpop.permute.xlu1 %1711 }
 0x41e   :  { %v1714_v32 = vmul.f32 %v4657_v30, %v1712_v31  ;;  %v63_v30 = vld [vmem:[%s6108_s0 + $0xc0] sm:$0xff]  ;;  %v64_v31 = vld [vmem:[%s6108_s0 + $0xc8] sm:$0xff] }
 0x420   :  { %1716 = vrot.lane.b32.xlu0 %v1714_v32, %s4772_s8  ;;  %v65_v32 = vld [vmem:[%s6108_s0 + $0xd0] sm:$0xff] }
 0x492   :  { %v1717_v34 = vpop.permute.xlu0 %1716 }
 0x493   :  { %v1719_v35 = vadd.f32 %v1717_v34, %v1498_v53  ;;  %v66_v34 = vld [vmem:[%s6108_s0 + $0xd8] sm:$0xff] }
 0x495   :  { %4658 = vtanh.f32 %v1719_v35  ;;  %v67_v35 = vld [vmem:[%s6108_s0 + $0xe0] sm:$0xff] }
 0x49f   :  { %v4659_v36 = vpop.eup %4658 }
 0x4a0   :  { %1723 = vrot.lane.b32.xlu1 %v4659_v36, %s4773_s9  ;;  %v68_v36 = vld [vmem:[%s6108_s0 + $0xe8] sm:$0xff] }
 0x512   :  { %v1724_v38 = vpop.permute.xlu1 %1723 }
 0x513   :  { %v1726_v41 = vmul.f32 %v1724_v38, %v1721_v37  ;;  %v69_v37 = vld [vmem:[%s6108_s0 + $0xf0] sm:$0xff] }
 0x515   :  { %v1728_v42 = vadd.f32 %v1727_v39, %v1726_v41 }
 0x517   :  { %1730 = vrot.lane.b32.xlu0 %v1728_v42, %s4773_s9 }
 0x589   :  { %v1731_v43 = vpop.permute.xlu0 %1730 }
 0x58a   :  { %1734 = vst.msk [vmem:[#allocation2 + $0x8] sm:$0xff] %vm1523_vm5, %v1731_v43  ;;  %4054 = vmatmul.mubr.msk.f32.vlgmr.msra.gmra.mrb[16].mxu1 %vm1523_vm5, %v1731_v43  ;;  %v71_v43 = vld [vmem:[%s6108_s0 + $0x100] sm:$0xff] }
 0x58b   :  { %4367 = vmatpush3.bf16.msra.mxu1 %v4901_v15  ;;  %4064 = vmatprep.mubr.msk.f32.mxu1 %vm4770_vm4, %v6122_v21 }
 0x58c   :  { %4368 = vmatprep.subr.bf16.mxu1 %v6120_v7 }
 0x58f   :  { %4370 = vmatpush3.bf16.msra.mxu1 %v4918_v20 }
 0x590   :  { %4371 = vmatprep.subr.bf16.mxu1 %v6120_v7 }
 0x65d   :  { %v1803_v44 = vpop.f32.mrb[16].mxu1 }
 0x65e   :  { %v1804_v45 = vadd.f32 %v4970_v60, %v1803_v44  ;;  %v4055_v46 = vpop.f32.mrb[17].mxu1  ;;  %v73_v44 = vld [vmem:[%s6108_s0 + $0x110] sm:$0xff] }
 0x65f   :  { %v75_v46 = vld [vmem:[%s6108_s0 + $0x120] sm:$0xff] }
 0x660   :  { %1815 = vrot.lane.b32.xlu1 %v1804_v45, %s4772_s8  ;;  %v1807_v48 = vadd.f32 %v1804_v45, %v4965_v59  ;;  %v74_v45 = vld [vmem:[%s6108_s0 + $0x118] sm:$0xff] }
 0x662   :  { %v3392_v49 = vmul.f32 -1.442695, %v1807_v48  ;;  %v76_v48 = vld [vmem:[%s6108_s0 + $0x128] sm:$0xff] }
 0x664   :  { %4660 = vpow2.f32 %v3392_v49  ;;  %v77_v49 = vld [vmem:[%s6108_s0 + $0x130] sm:$0xff] }
 0x66e   :  { %v4661_v15 = vpop.eup %4660 }
 0x66f   :  { %v1811_v50 = vadd.f32 1.0, %v4661_v15  ;;  %v78_v15 = vld [vmem:[%s6108_s0 + $0x138] sm:$0xff] }
 0x671   :  { %4662 = vrcp.f32 %v1811_v50  ;;  %v79_v50 = vld [vmem:[%s6108_s0 + $0x140] sm:$0xff] }
 0x67b   :  { %v4663_v51 = vpop.eup %4662 }
 0x67c   :  { %v1825_v58 = vsub.f32 1.0, %v4663_v51  ;;  %v1831_v62 = vmul.f32 %v4663_v51, %v1728_v42  ;;  %v70_v42 = vld [vmem:[%s6108_s0 + $0xf8] sm:$0xff] }
 0x6d2   :  { %v1816_v52 = vpop.permute.xlu1 %1815 }
 0x6d3   :  { %v1818_v53 = vmul.f32 %v4663_v51, %v1816_v52  ;;  %v80_v51 = vld [vmem:[%s6108_s0 + $0x148] sm:$0xff]  ;;  %v81_v52 = vld [vmem:[%s6108_s0 + $0x150] sm:$0xff] }
 0x6d5   :  { %1820 = vrot.lane.b32.xlu0 %v1818_v53, %s4772_s8  ;;  %v82_v53 = vld [vmem:[%s6108_s0 + $0x158] sm:$0xff] }
 0x747   :  { %v1821_v20 = vpop.permute.xlu0 %1820 }
 0x748   :  { %v1823_v54 = vadd.f32 %v1821_v20, %v4965_v59  ;;  %v39_v59 = vld [vmem:[%s6108_s0] sm:$0xff] }
 0x749   :  { %3823 = vmatprep.mubr.msk.f32.mxu0 %vm175_vm1, %v39_v59  ;;  %v83_v20 = vld [vmem:[%s6108_s0 + $0x160] sm:$0xff] }
 0x74a   :  { %4664 = vtanh.f32 %v1823_v54  ;;  %3824 = vmatmul.mubr.msk.f32.vlgmr.msra.gmra.mrb[0].mxu0 %vm175_vm1, %v40_v2  ;;  %v84_v54 = vld [vmem:[%s6108_s0 + $0x168] sm:$0xff]  ;;  %v91_v59 = vld [vmem:[%s6108_s0 + $0x1a0] sm:$0xff] }
 0x74b   :  { %3826 = vmatprep.mubr.msk.f32.mxu0 %vm175_vm1, %v41_v3  ;;  %v92_v2 = vld [vmem:[%s6108_s0 + $0x1a8] sm:$0xff]  ;;  %v93_v3 = vld [vmem:[%s6108_s0 + $0x1b0] sm:$0xff] }
 0x74e   :  { %3827 = vmatmul.mubr.msk.f32.gmra.mrb[2].mxu0 %vm175_vm1, %v42_v4  ;;  %v94_v4 = vld [vmem:[%s6108_s0 + $0x1b8] sm:$0xff] }
 0x74f   :  { %3829 = vmatprep.mubr.msk.f32.mxu0 %vm175_vm1, %v43_v5  ;;  %v95_v5 = vld [vmem:[%s6108_s0 + $0x1c0] sm:$0xff] }
 0x752   :  { %3830 = vmatmul.mubr.msk.f32.gmra.mrb[4].mxu0 %vm175_vm1, %v44_v6  ;;  %v96_v6 = vld [vmem:[%s6108_s0 + $0x1c8] sm:$0xff] }
 0x753   :  { %3832 = vmatprep.mubr.msk.f32.mxu0 %vm175_vm1, %v45_v8 }
 0x754   :  { %v4665_v56 = vpop.eup %4664 }
 0x755   :  { %1827 = vrot.lane.b32.xlu1 %v4665_v56, %s4773_s9  ;;  %v85_v56 = vld [vmem:[%s6108_s0 + $0x170] sm:$0xff] }
 0x756   :  { %3833 = vmatmul.mubr.msk.f32.gmra.mrb[6].mxu0 %vm175_vm1, %v46_v9 }
 0x757   :  { %3835 = vmatprep.mubr.msk.f32.mxu0 %vm175_vm1, %v47_v10 }
 0x75a   :  { %3836 = vmatmul.mubr.msk.f32.gmra.mrb[8].mxu0 %vm175_vm1, %v48_v11 }
 0x75b   :  { %3838 = vmatprep.mubr.msk.f32.mxu0 %vm175_vm1, %v49_v12  ;;  %v97_v12 = vld [vmem:[%s6108_s0 + $0x1d0] sm:$0xff] }
 0x75e   :  { %3839 = vmatmul.mubr.msk.f32.gmra.mrb[10].mxu0 %vm175_vm1, %v50_v13  ;;  %v98_v13 = vld [vmem:[%s6108_s0 + $0x1d8] sm:$0xff] }
 0x75f   :  { %3841 = vmatprep.mubr.msk.f32.mxu0 %vm175_vm1, %v51_v14  ;;  %v99_v14 = vld [vmem:[%s6108_s0 + $0x1e0] sm:$0xff] }
 0x762   :  { %3842 = vmatmul.mubr.msk.f32.gmra.mrb[12].mxu0 %vm175_vm1, %v52_v16  ;;  %v100_v16 = vld [vmem:[%s6108_s0 + $0x1e8] sm:$0xff] }
 0x763   :  { %3844 = vmatprep.mubr.msk.f32.mxu0 %vm175_vm1, %v53_v17  ;;  %v101_v17 = vld [vmem:[%s6108_s0 + $0x1f0] sm:$0xff] }
 0x766   :  { %3845 = vmatmul.mubr.msk.f32.gmra.mrb[14].mxu0 %vm175_vm1, %v54_v18  ;;  %v102_v18 = vld [vmem:[%s6108_s0 + $0x1f8] sm:$0xff] }
 0x767   :  { %3847 = vmatprep.mubr.msk.f32.mxu0 %vm175_vm1, %v55_v19 }
 0x76a   :  { %3848 = vmatmul.mubr.msk.f32.gmra.mrb[16].mxu0 %vm175_vm1, %v56_v22 }
 0x76b   :  { %3850 = vmatprep.mubr.msk.f32.mxu0 %vm175_vm1, %v57_v24 }
 0x76e   :  { %3851 = vmatmul.mubr.msk.f32.gmra.mrb[18].mxu0 %vm175_vm1, %v58_v25  ;;  %v103_v25 = vld [vmem:[%s6108_s0 + $0x200] sm:$0xff] }
 0x76f   :  { %3853 = vmatprep.mubr.msk.f32.mxu0 %vm175_vm1, %v59_v26  ;;  %v104_v26 = vld [vmem:[%s6108_s0 + $0x208] sm:$0xff] }
 0x772   :  { %3854 = vmatmul.mubr.msk.f32.gmra.mrb[20].mxu0 %vm175_vm1, %v60_v27  ;;  %v105_v27 = vld [vmem:[%s6108_s0 + $0x210] sm:$0xff] }
 0x773   :  { %3856 = vmatprep.mubr.msk.f32.mxu0 %vm175_vm1, %v61_v28 }
 0x776   :  { %3857 = vmatmul.mubr.msk.f32.gmra.mrb[22].mxu0 %vm175_vm1, %v62_v29  ;;  %v106_v29 = vld [vmem:[%s6108_s0 + $0x218] sm:$0xff] }
 0x777   :  { %3859 = vmatprep.mubr.msk.f32.mxu0 %vm175_vm1, %v63_v30 }
 0x77a   :  { %3860 = vmatmul.mubr.msk.f32.gmra.mrb[24].mxu0 %vm175_vm1, %v64_v31 }
 0x77b   :  { %3862 = vmatprep.mubr.msk.f32.mxu0 %vm175_vm1, %v65_v32 }
 0x77e   :  { %3863 = vmatmul.mubr.msk.f32.gmra.mrb[26].mxu0 %vm175_vm1, %v66_v34  ;;  %v107_v34 = vld [vmem:[%s6108_s0 + $0x220] sm:$0xff] }
 0x77f   :  { %3865 = vmatprep.mubr.msk.f32.mxu0 %vm175_vm1, %v67_v35 }
 0x782   :  { %3866 = vmatmul.mubr.msk.f32.gmra.mrb[28].mxu0 %vm175_vm1, %v68_v36 }
 0x783   :  { %3868 = vmatprep.mubr.msk.f32.mxu0 %vm175_vm1, %v69_v37 }
 0x786   :  { %3869 = vmatmul.mubr.msk.f32.gmra.mrb[30].mxu0 %vm175_vm1, %v70_v42 }
 0x787   :  { %3871 = vmatprep.mubr.msk.f32.mxu0 %vm175_vm1, %v71_v43 }
 0x7c7   :  { %v1828_v61 = vpop.permute.xlu1 %1827 }
 0x7c8   :  { %v1830_v63 = vmul.f32 %v1828_v61, %v1825_v58  ;;  %v86_v58 = vld [vmem:[%s6108_s0 + $0x178] sm:$0xff]  ;;  %v87_v61 = vld [vmem:[%s6108_s0 + $0x180] sm:$0xff] }
 0x7ca   :  { %v5005_v0 = vadd.f32 %v1831_v62, %v1830_v63  ;;  %v88_v62 = vld [vmem:[%s6108_s0 + $0x188] sm:$0xff]  ;;  %v89_v63 = vld [vmem:[%s6108_s0 + $0x190] sm:$0xff] }
 0x7cc   :  { %1834 = vrot.lane.b32.xlu0 %v5005_v0, %s4773_s9 }
 0x81d   :  { %v3825_v28 = vpop.f32.mrb[0].mxu0 }
 0x81e   :  { %v636_v30 = vadd.f32 %v3825_v28, %v4942_v23  ;;  %v630_v31 = vpop.f32.mrb[1].mxu0 }
 0x81f   :  { %v631_v32 = vadd.f32 %v4942_v23, %v630_v31 }
 0x820   :  { %v1270_v36 = vmax.f32 %v636_v30, 0.0 }
 0x821   :  { %v3828_v35 = vpop.f32.mrb[2].mxu0 }
 0x822   :  { %v646_v37 = vadd.f32 %v3828_v35, %v4942_v23 }
 0x83e   :  { %v1835_v1 = vpop.permute.xlu0 %1834 }
 0x83f   :  { %1838 = vst.msk [vmem:[#allocation2 + $0x10] sm:$0xff] %vm1523_vm5, %v1835_v1  ;;  %4065 = vmatmul.mubr.msk.f32.vlgmr.msra.gmra.mrb[18].mxu1 %vm1523_vm5, %v1835_v1  ;;  %v90_v1 = vld [vmem:[%s6108_s0 + $0x198] sm:$0xff] }
 0x840   :  { %4099 = vmatprep.mubr.msk.f32.mxu1 %vm4770_vm4, %v6122_v21 }
 0x912   :  { %v1907_v38 = vpop.f32.mrb[18].mxu1 }
 0x913   :  { %v1908_v39 = vadd.f32 %v4970_v60, %v1907_v38  ;;  %v4066_v41 = vpop.f32.mrb[19].mxu1  ;;  %v72_v60 = vld [vmem:[%s6108_s0 + $0x108] sm:$0xff]  ;;  %v640_v38 = vpop.f32.mrb[3].mxu0 }
 0x914   :  { %3872 = vmatmul.mubr.msk.f32.gmra.mrb[32].mxu0 %vm175_vm1, %v72_v60  ;;  %v641_v41 = vadd.f32 %v4942_v23, %v640_v38  ;;  %v3831_v42 = vpop.f32.mrb[4].mxu0  ;;  %v108_v60 = vld [vmem:[%s6108_s0 + $0x228] sm:$0xff] }
 0x915   :  { %1919 = vrot.lane.b32.xlu1 %v1908_v39, %s4772_s8  ;;  %3874 = vmatprep.mubr.msk.f32.mxu0 %vm175_vm1, %v73_v44  ;;  %v1911_v8 = vadd.f32 %v1908_v39, %v4963_v57  ;;  %v1269_v39 = vmax.f32 %v631_v32, 0.0  ;;  %v1272_v44 = vmax.f32 %v646_v37, 0.0 }
 0x917   :  { %v3394_v9 = vmul.f32 -1.442695, %v1911_v8 }
 0x918   :  { %3875 = vmatmul.mubr.msk.f32.gmra.mrb[34].mxu0 %vm175_vm1, %v74_v45  ;;  %v656_v45 = vadd.f32 %v3831_v42, %v4942_v23 }
 0x919   :  { %3877 = vmatprep.mubr.msk.f32.mxu0 %vm175_vm1, %v75_v46  ;;  %4666 = vpow2.f32 %v3394_v9  ;;  %v650_v46 = vpop.f32.mrb[5].mxu0 }
 0x91c   :  { %3878 = vmatmul.mubr.msk.f32.gmra.mrb[36].mxu0 %vm175_vm1, %v76_v48  ;;  %v4372_v48 = vpack.c.bf16 %v1270_v36, %v1269_v39  ;;  %v114_v36 = vld [vmem:[%s6108_s0 + $0x258] sm:$0xff]  ;;  %v115_v39 = vld [vmem:[%s6108_s0 + $0x260] sm:$0xff] }
 0x91d   :  { %3880 = vmatprep.mubr.msk.f32.mxu0 %vm175_vm1, %v77_v49  ;;  %v109_v49 = vld [vmem:[%s6108_s0 + $0x230] sm:$0xff] }
 0x91e   :  { %4374 = vmatpush3.bf16.xpose.msk.msra.mxu1 %vm5301_vm6, %v4372_v48 }
 0x91f   :  { %4375 = vmatprep.subr.bf16.mxu1 %v6120_v7 }
 0x920   :  { %3881 = vmatmul.mubr.msk.f32.gmra.mrb[38].mxu0 %vm175_vm1, %v78_v15  ;;  %v1271_v15 = vmax.f32 %v641_v41, 0.0 }
 0x921   :  { %3883 = vmatprep.mubr.msk.f32.mxu0 %vm175_vm1, %v79_v50  ;;  %v651_v50 = vadd.f32 %v4942_v23, %v650_v46 }
 0x923   :  { %v4667_v10 = vpop.eup %4666 }
 0x924   :  { %3884 = vmatmul.mubr.msk.f32.gmra.mrb[40].mxu0 %vm175_vm1, %v80_v51  ;;  %v1915_v11 = vadd.f32 1.0, %v4667_v10  ;;  %v3834_v51 = vpop.f32.mrb[6].mxu0 }
 0x925   :  { %3886 = vmatprep.mubr.msk.f32.mxu0 %vm175_vm1, %v81_v52  ;;  %v1274_v52 = vmax.f32 %v656_v45, 0.0 }
 0x926   :  { %4668 = vrcp.f32 %v1915_v11 }
 0x928   :  { %3887 = vmatmul.mubr.msk.f32.gmra.mrb[42].mxu0 %vm175_vm1, %v82_v53  ;;  %v666_v53 = vadd.f32 %v3834_v51, %v4942_v23  ;;  %v117_v51 = vld [vmem:[%s6108_s0 + $0x270] sm:$0xff] }
 0x929   :  { %3889 = vmatprep.mubr.msk.f32.mxu0 %vm175_vm1, %v83_v20  ;;  %v660_v20 = vpop.f32.mrb[7].mxu0 }
 0x92c   :  { %3890 = vmatmul.mubr.msk.f32.gmra.mrb[44].mxu0 %vm175_vm1, %v84_v54  ;;  %v4376_v54 = vpack.c.bf16 %v1272_v44, %v1271_v15 }
 0x92d   :  { %3892 = vmatprep.mubr.msk.f32.mxu0 %vm175_vm1, %v85_v56  ;;  %v1273_v56 = vmax.f32 %v651_v50, 0.0 }
 0x92e   :  { %4378 = vmatpush3.bf16.xpose.msk.msra.mxu1 %vm5301_vm6, %v4376_v54 }
 0x92f   :  { %4379 = vmatprep.subr.bf16.mxu1 %v6120_v7 }
 0x930   :  { %3893 = vmatmul.mubr.msk.f32.gmra.mrb[46].mxu0 %vm175_vm1, %v86_v58  ;;  %v5272_v19 = vpop.eup %4668  ;;  %v661_v58 = vadd.f32 %v4942_v23, %v660_v20 }
 0x931   :  { %3895 = vmatprep.mubr.msk.f32.mxu0 %vm175_vm1, %v87_v61  ;;  %v3837_v61 = vpop.f32.mrb[8].mxu0 }
 0x934   :  { %3896 = vmatmul.mubr.msk.f32.gmra.mrb[48].mxu0 %vm175_vm1, %v88_v62  ;;  %v110_v62 = vld [vmem:[%s6108_s0 + $0x238] sm:$0xff] }
 0x935   :  { %3898 = vmatprep.mubr.msk.f32.mxu0 %vm175_vm1, %v89_v63  ;;  %v1276_v63 = vmax.f32 %v666_v53, 0.0 }
 0x938   :  { %3899 = vmatmul.mubr.msk.f32.gmra.mrb[50].mxu0 %vm175_vm1, %v90_v1  ;;  %v676_v1 = vadd.f32 %v3837_v61, %v4942_v23 }
 0x939   :  { %3901 = vmatprep.mubr.msk.f32.mxu0 %vm175_vm1, %v91_v59  ;;  %v670_v59 = vpop.f32.mrb[9].mxu0 }
 0x93a   :  { %v1278_v8 = vmax.f32 %v676_v1, 0.0 }
 0x93c   :  { %3902 = vmatmul.mubr.msk.f32.gmra.mrb[52].mxu0 %vm175_vm1, %v92_v2  ;;  %v111_v2 = vld [vmem:[%s6108_s0 + $0x240] sm:$0xff] }
 0x93d   :  { %3904 = vmatprep.mubr.msk.f32.mxu0 %vm175_vm1, %v93_v3  ;;  %v4380_v3 = vpack.c.bf16 %v1274_v52, %v1273_v56 }
 0x93f   :  { %4382 = vmatpush3.bf16.xpose.msk.msra.mxu1 %vm5301_vm6, %v4380_v3 }
 0x940   :  { %3905 = vmatmul.mubr.msk.f32.gmra.mrb[54].mxu0 %vm175_vm1, %v94_v4  ;;  %v1275_v4 = vmax.f32 %v661_v58, 0.0  ;;  %v118_v58 = vld [vmem:[%s6108_s0 + $0x278] sm:$0xff]  ;;  %4383 = vmatprep.subr.bf16.mxu1 %v6120_v7 }
 0x941   :  { %3907 = vmatprep.mubr.msk.f32.mxu0 %vm175_vm1, %v95_v5  ;;  %v671_v5 = vadd.f32 %v4942_v23, %v670_v59 }
 0x942   :  { %v5331_v11 = vpack.c.bf16 %v1276_v63, %v1275_v4  ;;  %v119_v63 = vld [vmem:[%s6108_s0 + $0x280] sm:$0xff] }
 0x944   :  { %3908 = vmatmul.mubr.msk.f32.gmra.mrb[56].mxu0 %vm175_vm1, %v96_v6  ;;  %v3840_v6 = vpop.f32.mrb[10].mxu0 }
 0x945   :  { %3910 = vmatprep.mubr.msk.f32.mxu0 %vm175_vm1, %v97_v12  ;;  %v686_v9 = vadd.f32 %v3840_v6, %v4942_v23  ;;  %v680_v10 = vpop.f32.mrb[11].mxu0  ;;  %v1277_v12 = vmax.f32 %v671_v5, 0.0  ;;  %v120_v5 = vld [vmem:[%s6108_s0 + $0x288] sm:$0xff] }
 0x947   :  { %4386 = vmatpush3.bf16.xpose.msk.msra.mxu1 %vm5301_vm6, %v5331_v11  ;;  %v124_v11 = vld [vmem:[%s6108_s0 + $0x2a8] sm:$0xff] }
 0x948   :  { %3911 = vmatmul.mubr.msk.f32.gmra.mrb[58].mxu0 %vm175_vm1, %v98_v13  ;;  %v681_v13 = vadd.f32 %v4942_v23, %v680_v10  ;;  %4387 = vmatprep.subr.bf16.mxu1 %v6120_v7 }
 0x949   :  { %3913 = vmatprep.mubr.msk.f32.mxu0 %vm175_vm1, %v99_v14  ;;  %v3843_v14 = vpop.f32.mrb[12].mxu0 }
 0x94c   :  { %3914 = vmatmul.mubr.msk.f32.gmra.mrb[60].mxu0 %vm175_vm1, %v100_v16  ;;  %v112_v16 = vld [vmem:[%s6108_s0 + $0x248] sm:$0xff] }
 0x94d   :  { %3916 = vmatprep.mubr.msk.f32.mxu0 %vm175_vm1, %v101_v17  ;;  %v1280_v17 = vmax.f32 %v686_v9, 0.0  ;;  %v121_v9 = vld [vmem:[%s6108_s0 + $0x290] sm:$0xff] }
 0x950   :  { %3917 = vmatmul.mubr.msk.f32.gmra.mrb[62].mxu0 %vm175_vm1, %v102_v18  ;;  %v696_v18 = vadd.f32 %v3843_v14, %v4942_v23 }
 0x951   :  { %3919 = vmatprep.mubr.msk.f32.mxu0 %vm175_vm1, %v103_v25  ;;  %v5342_v25 = vpack.c.bf16 %v1278_v8, %v1277_v12 }
 0x953   :  { %4390 = vmatpush3.bf16.xpose.msk.msra.mxu1 %vm5301_vm6, %v5342_v25  ;;  %v128_v25 = vld [vmem:[%s6108_s0 + $0x2c8] sm:$0xff] }
 0x954   :  { %3920 = vmatmul.mubr.msk.f32.gmra.mrb[64].mxu0 %vm175_vm1, %v104_v26  ;;  %v1279_v26 = vmax.f32 %v681_v13, 0.0  ;;  %4391 = vmatprep.subr.bf16.mxu1 %v6120_v7 }
 0x955   :  { %3922 = vmatprep.mubr.msk.f32.mxu0 %vm175_vm1, %v105_v27 }
 0x956   :  { %v5349_v32 = vpack.c.bf16 %v1280_v17, %v1279_v26  ;;  %v122_v17 = vld [vmem:[%s6108_s0 + $0x298] sm:$0xff]  ;;  %v125_v26 = vld [vmem:[%s6108_s0 + $0x2b0] sm:$0xff] }
 0x958   :  { %3923 = vmatmul.mubr.msk.f32.gmra.mrb[66].mxu0 %vm175_vm1, %v106_v29  ;;  %v1282_v29 = vmax.f32 %v696_v18, 0.0 }
 0x959   :  { %3925 = vmatprep.mubr.msk.f32.mxu0 %vm175_vm1, %v107_v34 }
 0x95b   :  { %4394 = vmatpush3.bf16.xpose.msk.msra.mxu1 %vm5301_vm6, %v5349_v32  ;;  %v132_v32 = vld [vmem:[%s6108_s0 + $0x2e8] sm:$0xff] }
 0x95c   :  { %3926 = vmatmul.mubr.msk.f32.gmra.mrb[68].mxu0 %vm175_vm1, %v108_v60  ;;  %4395 = vmatprep.subr.bf16.mxu1 %v6120_v7 }
 0x95d   :  { %3928 = vmatprep.mubr.msk.f32.mxu0 %vm175_vm1, %v109_v49  ;;  %v116_v49 = vld [vmem:[%s6108_s0 + $0x268] sm:$0xff] }
 0x960   :  { %3929 = vmatmul.mubr.msk.f32.gmra.mrb[70].mxu0 %vm175_vm1, %v110_v62 }
 0x961   :  { %3931 = vmatprep.mubr.msk.f32.mxu0 %vm175_vm1, %v111_v2 }
 0x964   :  { %3932 = vmatmul.mubr.msk.f32.gmra.mrb[72].mxu0 %vm175_vm1, %v112_v16 }
 0x987   :  { %v1920_v22 = vpop.permute.xlu1 %1919 }
 0x988   :  { %v1922_v24 = vmul.f32 %v5272_v19, %v1920_v22  ;;  %v690_v22 = vpop.f32.mrb[13].mxu0 }
 0x989   :  { %v691_v27 = vadd.f32 %v4942_v23, %v690_v22  ;;  %v3846_v28 = vpop.f32.mrb[14].mxu0  ;;  %v123_v22 = vld [vmem:[%s6108_s0 + $0x2a0] sm:$0xff] }
 0x98a   :  { %1924 = vrot.lane.b32.xlu0 %v1922_v24, %s4772_s8  ;;  %v113_v24 = vld [vmem:[%s6108_s0 + $0x250] sm:$0xff]  ;;  %v706_v30 = vadd.f32 %v3846_v28, %v4942_v23  ;;  %v700_v31 = vpop.f32.mrb[15].mxu0  ;;  %v127_v28 = vld [vmem:[%s6108_s0 + $0x2c0] sm:$0xff] }
 0x98b   :  { %v1281_v34 = vmax.f32 %v691_v27, 0.0  ;;  %v701_v35 = vadd.f32 %v4942_v23, %v700_v31  ;;  %3934 = vmatprep.mubr.msk.f32.mxu0 %vm175_vm1, %v113_v24  ;;  %v3849_v38 = vpop.f32.mrb[16].mxu0  ;;  %v126_v27 = vld [vmem:[%s6108_s0 + $0x2b8] sm:$0xff]  ;;  %v131_v31 = vld [vmem:[%s6108_s0 + $0x2e0] sm:$0xff] }
 0x98c   :  { %v1284_v37 = vmax.f32 %v706_v30, 0.0  ;;  %v716_v60 = vadd.f32 %v3849_v38, %v4942_v23  ;;  %v710_v44 = vpop.f32.mrb[17].mxu0  ;;  %3935 = vmatmul.mubr.msk.f32.gmra.mrb[74].mxu0 %vm175_vm1, %v114_v36  ;;  %v130_v30 = vld [vmem:[%s6108_s0 + $0x2d8] sm:$0xff]  ;;  %v135_v36 = vld [vmem:[%s6108_s0 + $0x300] sm:$0xff]  ;;  %v137_v38 = vld [vmem:[%s6108_s0 + $0x310] sm:$0xff] }
 0x98d   :  { %v5360_v41 = vpack.c.bf16 %v1282_v29, %v1281_v34  ;;  %v1283_v42 = vmax.f32 %v701_v35, 0.0  ;;  %v711_v45 = vadd.f32 %v4942_v23, %v710_v44  ;;  %3937 = vmatprep.mubr.msk.f32.mxu0 %vm175_vm1, %v115_v39  ;;  %v3852_v50 = vpop.f32.mrb[18].mxu0  ;;  %v129_v29 = vld [vmem:[%s6108_s0 + $0x2d0] sm:$0xff]  ;;  %v134_v35 = vld [vmem:[%s6108_s0 + $0x2f8] sm:$0xff] }
 0x98e   :  { %v1286_v48 = vmax.f32 %v716_v60, 0.0  ;;  %v726_v52 = vadd.f32 %v3852_v50, %v4942_v23  ;;  %v720_v53 = vpop.f32.mrb[19].mxu0  ;;  %v133_v34 = vld [vmem:[%s6108_s0 + $0x2f0] sm:$0xff]  ;;  %v138_v39 = vld [vmem:[%s6108_s0 + $0x318] sm:$0xff] }
 0x98f   :  { %v5365_v46 = vpack.c.bf16 %v1284_v37, %v1283_v42  ;;  %v1285_v15 = vmax.f32 %v711_v45, 0.0  ;;  %v721_v54 = vadd.f32 %v4942_v23, %v720_v53  ;;  %v3855_v62 = vpop.f32.mrb[20].mxu0  ;;  %4398 = vmatpush3.bf16.xpose.msk.msra.mxu1 %vm5301_vm6, %v5360_v41  ;;  %v136_v37 = vld [vmem:[%s6108_s0 + $0x308] sm:$0xff]  ;;  %v139_v41 = vld [vmem:[%s6108_s0 + $0x320] sm:$0xff]  ;;  %v141_v60 = vld [vmem:[%s6108_s0 + $0x330] sm:$0xff] }
 0x990   :  { %3938 = vmatmul.mubr.msk.f32.gmra.mrb[76].mxu0 %vm175_vm1, %v116_v49  ;;  %v1288_v56 = vmax.f32 %v726_v52, 0.0  ;;  %v736_v1 = vadd.f32 %v3855_v62, %v4942_v23  ;;  %v730_v59 = vpop.f32.mrb[21].mxu0  ;;  %4399 = vmatprep.subr.bf16.mxu1 %v6120_v7  ;;  %v140_v42 = vld [vmem:[%s6108_s0 + $0x328] sm:$0xff]  ;;  %v142_v44 = vld [vmem:[%s6108_s0 + $0x338] sm:$0xff]  ;;  %v143_v45 = vld [vmem:[%s6108_s0 + $0x340] sm:$0xff] }
 0x991   :  { %v5375_v20 = vpack.c.bf16 %v1286_v48, %v1285_v15  ;;  %3940 = vmatprep.mubr.msk.f32.mxu0 %vm175_vm1, %v117_v51  ;;  %v1287_v61 = vmax.f32 %v721_v54, 0.0  ;;  %v731_v3 = vadd.f32 %v4942_v23, %v730_v59  ;;  %v3858_v8 = vpop.f32.mrb[22].mxu0  ;;  %v145_v48 = vld [vmem:[%s6108_s0 + $0x350] sm:$0xff]  ;;  %v146_v49 = vld [vmem:[%s6108_s0 + $0x358] sm:$0xff]  ;;  %v147_v15 = vld [vmem:[%s6108_s0 + $0x360] sm:$0xff] }
 0x992   :  { %v1290_v4 = vmax.f32 %v736_v1, 0.0  ;;  %v746_v10 = vadd.f32 %v3858_v8, %v4942_v23  ;;  %v740_v12 = vpop.f32.mrb[23].mxu0  ;;  %v148_v54 = vld [vmem:[%s6108_s0 + $0x368] sm:$0xff] }
 0x993   :  { %v5390_v2 = vpack.c.bf16 %v1288_v56, %v1287_v61  ;;  %v1289_v6 = vmax.f32 %v731_v3, 0.0  ;;  %v741_v14 = vadd.f32 %v4942_v23, %v740_v12  ;;  %v3861_v50 = vpop.f32.mrb[24].mxu0 }
 0x994   :  { %3941 = vmatmul.mubr.msk.f32.gmra.mrb[78].mxu0 %vm175_vm1, %v118_v58  ;;  %v1292_v16 = vmax.f32 %v746_v10, 0.0  ;;  %v756_v51 = vadd.f32 %v3861_v50, %v4942_v23  ;;  %v750_v52 = vpop.f32.mrb[25].mxu0  ;;  %v149_v58 = vld [vmem:[%s6108_s0 + $0x370] sm:$0xff] }
 0x995   :  { %3943 = vmatprep.mubr.msk.f32.mxu0 %vm175_vm1, %v119_v63  ;;  %v5402_v13 = vpack.c.bf16 %v1290_v4, %v1289_v6  ;;  %v1291_v18 = vmax.f32 %v741_v14, 0.0  ;;  %v751_v53 = vadd.f32 %v4942_v23, %v750_v52  ;;  %v3864_v62 = vpop.f32.mrb[26].mxu0  ;;  %v150_v4 = vld [vmem:[%s6108_s0 + $0x378] sm:$0xff]  ;;  %v151_v6 = vld [vmem:[%s6108_s0 + $0x380] sm:$0xff] }
 0x996   :  { %v1294_v56 = vmax.f32 %v756_v51, 0.0  ;;  %v766_v63 = vadd.f32 %v3864_v62, %v4942_v23  ;;  %v760_v1 = vpop.f32.mrb[27].mxu0 }
 0x997   :  { %v5417_v24 = vpack.c.bf16 %v1292_v16, %v1291_v18  ;;  %4402 = vmatpush3.bf16.xpose.msk.msra.mxu1 %vm5301_vm6, %v5365_v46  ;;  %v144_v46 = vld [vmem:[%s6108_s0 + $0x348] sm:$0xff]  ;;  %v1293_v61 = vmax.f32 %v751_v53, 0.0  ;;  %v761_v3 = vadd.f32 %v4942_v23, %v760_v1 }
 0x998   :  { %3944 = vmatmul.mubr.msk.f32.gmra.mrb[80].mxu0 %vm175_vm1, %v120_v5  ;;  %4403 = vmatprep.subr.bf16.mxu1 %v6120_v7  ;;  %v1296_v5 = vmax.f32 %v766_v63, 0.0 }
 0x999   :  { %3946 = vmatprep.mubr.msk.f32.mxu0 %vm175_vm1, %v121_v9  ;;  %v5543_v59 = vpack.c.bf16 %v1294_v56, %v1293_v61  ;;  %v1295_v8 = vmax.f32 %v761_v3, 0.0  ;;  %v3867_v9 = vpop.f32.mrb[28].mxu0 }
 0x99a   :  { %v776_v10 = vadd.f32 %v3867_v9, %v4942_v23  ;;  %v770_v12 = vpop.f32.mrb[29].mxu0 }
 0x99b   :  { %v5555_v14 = vpack.c.bf16 %v1296_v5, %v1295_v8  ;;  %v771_v16 = vadd.f32 %v4942_v23, %v770_v12 }
 0x99c   :  { %3947 = vmatmul.mubr.msk.f32.gmra.mrb[82].mxu0 %vm175_vm1, %v122_v17  ;;  %v152_v17 = vld [vmem:[%s6108_s0 + $0x388] sm:$0xff]  ;;  %v1298_v18 = vmax.f32 %v776_v10, 0.0 }
 0x99d   :  { %3949 = vmatprep.mubr.msk.f32.mxu0 %vm175_vm1, %v123_v22  ;;  %v153_v22 = vld [vmem:[%s6108_s0 + $0x390] sm:$0xff] }
 0x9a0   :  { %3950 = vmatmul.mubr.msk.f32.gmra.mrb[84].mxu0 %vm175_vm1, %v124_v11  ;;  %v1297_v11 = vmax.f32 %v771_v16, 0.0 }
 0x9a1   :  { %3952 = vmatprep.mubr.msk.f32.mxu0 %vm175_vm1, %v125_v26  ;;  %v3870_v26 = vpop.f32.mrb[30].mxu0 }
 0x9a4   :  { %3953 = vmatmul.mubr.msk.f32.gmra.mrb[86].mxu0 %vm175_vm1, %v126_v27  ;;  %v786_v27 = vadd.f32 %v3870_v26, %v4942_v23 }
 0x9a5   :  { %3955 = vmatprep.mubr.msk.f32.mxu0 %vm175_vm1, %v127_v28  ;;  %v780_v28 = vpop.f32.mrb[31].mxu0 }
 0x9a8   :  { %3956 = vmatmul.mubr.msk.f32.gmra.mrb[88].mxu0 %vm175_vm1, %v128_v25  ;;  %v5567_v25 = vpack.c.bf16 %v1298_v18, %v1297_v11  ;;  %v157_v18 = vld [vmem:[%s6108_s0 + $0x3b0] sm:$0xff] }
 0x9a9   :  { %3958 = vmatprep.mubr.msk.f32.mxu0 %vm175_vm1, %v129_v29  ;;  %v781_v29 = vadd.f32 %v4942_v23, %v780_v28 }
 0x9ac   :  { %3959 = vmatmul.mubr.msk.f32.gmra.mrb[90].mxu0 %vm175_vm1, %v130_v30  ;;  %v154_v30 = vld [vmem:[%s6108_s0 + $0x398] sm:$0xff] }
 0x9ad   :  { %3961 = vmatprep.mubr.msk.f32.mxu0 %vm175_vm1, %v131_v31  ;;  %v1300_v31 = vmax.f32 %v786_v27, 0.0 }
 0x9b0   :  { %3962 = vmatmul.mubr.msk.f32.gmra.mrb[92].mxu0 %vm175_vm1, %v132_v32  ;;  %v155_v32 = vld [vmem:[%s6108_s0 + $0x3a0] sm:$0xff] }
 0x9b1   :  { %3964 = vmatprep.mubr.msk.f32.mxu0 %vm175_vm1, %v133_v34  ;;  %v1299_v34 = vmax.f32 %v781_v29, 0.0 }
 0x9b4   :  { %3965 = vmatmul.mubr.msk.f32.gmra.mrb[94].mxu0 %vm175_vm1, %v134_v35 }
 0x9b5   :  { %3967 = vmatprep.mubr.msk.f32.mxu0 %vm175_vm1, %v135_v36  ;;  %v5580_v36 = vld [vmem:[%s6113_s5] ss:$0 sm:$0xff] }
 0x9b8   :  { %3968 = vmatmul.mubr.msk.f32.gmra.mrb[96].mxu0 %vm175_vm1, %v136_v37 }
 0x9b9   :  { %3970 = vmatprep.mubr.msk.f32.mxu0 %vm175_vm1, %v137_v38  ;;  %v5584_v38 = vpack.c.bf16 %v1300_v31, %v1299_v34 }
 0x9bc   :  { %3971 = vmatmul.mubr.msk.f32.gmra.mrb[98].mxu0 %vm175_vm1, %v138_v39 }
 0x9bd   :  { %3973 = vmatprep.mubr.msk.f32.mxu0 %vm175_vm1, %v139_v41  ;;  %v156_v41 = vld [vmem:[%s6108_s0 + $0x3a8] sm:$0xff] }
 0x9c0   :  { %3974 = vmatmul.mubr.msk.f32.gmra.mrb[100].mxu0 %vm175_vm1, %v140_v42 }
 0x9c1   :  { %3976 = vmatprep.mubr.msk.f32.mxu0 %vm175_vm1, %v141_v60 }
 0x9c4   :  { %3977 = vmatmul.mubr.msk.f32.gmra.mrb[102].mxu0 %vm175_vm1, %v142_v44 }
 0x9c5   :  { %3979 = vmatprep.mubr.msk.f32.mxu0 %vm175_vm1, %v143_v45 }
 0x9c8   :  { %3980 = vmatmul.mubr.msk.f32.gmra.mrb[104].mxu0 %vm175_vm1, %v144_v46 }
 0x9c9   :  { %3982 = vmatprep.mubr.msk.f32.mxu0 %vm175_vm1, %v145_v48 }
 0x9cc   :  { %3983 = vmatmul.mubr.msk.f32.gmra.mrb[106].mxu0 %vm175_vm1, %v146_v49 }
 0x9cd   :  { %3985 = vmatprep.mubr.msk.f32.mxu0 %vm175_vm1, %v147_v15 }
 0x9d0   :  { %3986 = vmatmul.mubr.msk.f32.gmra.mrb[108].mxu0 %vm175_vm1, %v148_v54 }
 0x9d1   :  { %3988 = vmatprep.mubr.msk.f32.mxu0 %vm175_vm1, %v149_v58 }
 0x9d4   :  { %3989 = vmatmul.mubr.msk.f32.gmra.mrb[110].mxu0 %vm175_vm1, %v150_v4 }
 0x9d5   :  { %3991 = vmatprep.mubr.msk.f32.mxu0 %vm175_vm1, %v151_v6 }
 0x9d8   :  { %3992 = vmatmul.mubr.msk.f32.gmra.mrb[112].mxu0 %vm175_vm1, %v152_v17 }
 0x9d9   :  { %3994 = vmatprep.mubr.msk.f32.mxu0 %vm175_vm1, %v153_v22 }
 0x9dc   :  { %3995 = vmatmul.mubr.msk.f32.gmra.mrb[114].mxu0 %vm175_vm1, %v154_v30 }
 0x9dd   :  { %3997 = vmatprep.mubr.msk.f32.mxu0 %vm175_vm1, %v155_v32 }
 0x9e0   :  { %3998 = vmatmul.mubr.msk.f32.gmra.mrb[116].mxu0 %vm175_vm1, %v156_v41 }
 0x9e1   :  { %4000 = vmatprep.mubr.msk.f32.mxu0 %vm175_vm1, %v157_v18 }
 0x9e7   :  { %v3873_v35 = vpop.f32.mrb[32].mxu0 }
 0x9e8   :  { %v796_v23 = vadd.f32 %v5580_v36, %v3873_v35  ;;  %v790_v37 = vpop.f32.mrb[33].mxu0 }
 0x9e9   :  { %v791_v39 = vadd.f32 %v5580_v36, %v790_v37 }
 0x9ea   :  { %v1302_v42 = vmax.f32 %v796_v23, 0.0 }
 0x9eb   :  { %v1301_v60 = vmax.f32 %v791_v39, 0.0  ;;  %v3876_v44 = vpop.f32.mrb[34].mxu0 }
 0x9ec   :  { %v806_v45 = vadd.f32 %v5580_v36, %v3876_v44  ;;  %v800_v46 = vpop.f32.mrb[35].mxu0 }
 0x9ed   :  { %v5593_v48 = vpack.c.bf16 %v1302_v42, %v1301_v60  ;;  %v801_v49 = vadd.f32 %v5580_v36, %v800_v46 }
 0x9ee   :  { %v1304_v15 = vmax.f32 %v806_v45, 0.0 }
 0x9ef   :  { %v1303_v50 = vmax.f32 %v801_v49, 0.0  ;;  %v3879_v51 = vpop.f32.mrb[36].mxu0 }
 0x9f0   :  { %v816_v52 = vadd.f32 %v5580_v36, %v3879_v51  ;;  %v810_v53 = vpop.f32.mrb[37].mxu0 }
 0x9f1   :  { %v5597_v54 = vpack.c.bf16 %v1304_v15, %v1303_v50  ;;  %v811_v56 = vadd.f32 %v5580_v36, %v810_v53 }
 0x9f2   :  { %v1306_v58 = vmax.f32 %v816_v52, 0.0 }
 0x9f3   :  { %v1305_v61 = vmax.f32 %v811_v56, 0.0  ;;  %v3882_v62 = vpop.f32.mrb[38].mxu0 }
 0x9f4   :  { %v826_v63 = vadd.f32 %v5580_v36, %v3882_v62  ;;  %v820_v1 = vpop.f32.mrb[39].mxu0 }
 0x9f5   :  { %v5601_v3 = vpack.c.bf16 %v1306_v58, %v1305_v61  ;;  %v821_v4 = vadd.f32 %v5580_v36, %v820_v1 }
 0x9f6   :  { %v1308_v6 = vmax.f32 %v826_v63, 0.0 }
 0x9f7   :  { %v1307_v9 = vmax.f32 %v821_v4, 0.0  ;;  %v3885_v12 = vpop.f32.mrb[40].mxu0 }
 0x9f8   :  { %v836_v16 = vadd.f32 %v5580_v36, %v3885_v12  ;;  %v830_v17 = vpop.f32.mrb[41].mxu0 }
 0x9f9   :  { %v5605_v10 = vpack.c.bf16 %v1308_v6, %v1307_v9  ;;  %v831_v22 = vadd.f32 %v5580_v36, %v830_v17 }
 0x9fa   :  { %v1310_v26 = vmax.f32 %v836_v16, 0.0 }
 0x9fb   :  { %v3888_v11 = vpop.f32.mrb[42].mxu0  ;;  %v1309_v29 = vmax.f32 %v831_v22, 0.0 }
 0x9fc   :  { %v1925_v5 = vpop.permute.xlu0 %1924  ;;  %v846_v27 = vadd.f32 %v5580_v36, %v3888_v11  ;;  %v840_v28 = vpop.f32.mrb[43].mxu0 }
 0x9fd   :  { %v1927_v8 = vadd.f32 %v1925_v5, %v4963_v57  ;;  %v158_v57 = vld [vmem:[%s6108_s0 + $0x3b8] sm:$0xff]  ;;  %v841_v30 = vadd.f32 %v5580_v36, %v840_v28  ;;  %v5621_v32 = vpack.c.bf16 %v1310_v26, %v1309_v29 }
 0x9fe   :  { %4001 = vmatmul.mubr.msk.f32.gmra.mrb[118].mxu0 %vm175_vm1, %v158_v57  ;;  %v1312_v31 = vmax.f32 %v846_v27, 0.0 }
 0x9ff   :  { %4670 = vtanh.f32 %v1927_v8  ;;  %4204 = vmatprep.mubr.msk.f32.mxu0 %vm4770_vm4, %v6122_v21  ;;  %v1311_v34 = vmax.f32 %v841_v30, 0.0  ;;  %v3891_v35 = vpop.f32.mrb[44].mxu0 }
 0xa00   :  { %v856_v23 = vadd.f32 %v5580_v36, %v3891_v35  ;;  %v850_v37 = vpop.f32.mrb[45].mxu0 }
 0xa01   :  { %v5624_v39 = vpack.c.bf16 %v1312_v31, %v1311_v34  ;;  %v851_v41 = vadd.f32 %v5580_v36, %v850_v37 }
 0xa02   :  { %v1314_v42 = vmax.f32 %v856_v23, 0.0 }
 0xa03   :  { %v1313_v44 = vmax.f32 %v851_v41, 0.0  ;;  %v3894_v45 = vpop.f32.mrb[46].mxu0 }
 0xa04   :  { %v866_v46 = vadd.f32 %v5580_v36, %v3894_v45  ;;  %v860_v49 = vpop.f32.mrb[47].mxu0 }
 0xa05   :  { %v5629_v15 = vpack.c.bf16 %v1314_v42, %v1313_v44  ;;  %v861_v50 = vadd.f32 %v5580_v36, %v860_v49 }
 0xa06   :  { %v1316_v51 = vmax.f32 %v866_v46, 0.0 }
 0xa07   :  { %v1315_v52 = vmax.f32 %v861_v50, 0.0  ;;  %v3897_v53 = vpop.f32.mrb[48].mxu0 }
 0xa08   :  { %v876_v56 = vadd.f32 %v5580_v36, %v3897_v53  ;;  %v870_v58 = vpop.f32.mrb[49].mxu0 }
 0xa09   :  { %v4671_v60 = vpop.eup %4670  ;;  %v5633_v61 = vpack.c.bf16 %v1316_v51, %v1315_v52  ;;  %v871_v62 = vadd.f32 %v5580_v36, %v870_v58 }
 0xa0a   :  { %1931 = vrot.lane.b32.xlu1 %v4671_v60, %s4773_s9  ;;  %v1318_v63 = vmax.f32 %v876_v56, 0.0 }
 0xa0b   :  { %v1317_v1 = vmax.f32 %v871_v62, 0.0  ;;  %v3900_v4 = vpop.f32.mrb[50].mxu0 }
 0xa0c   :  { %v886_v5 = vadd.f32 %v5580_v36, %v3900_v4  ;;  %v880_v6 = vpop.f32.mrb[51].mxu0 }
 0xa0d   :  { %v4468_v8 = vpack.c.bf16 %v1318_v63, %v1317_v1  ;;  %v881_v9 = vadd.f32 %v5580_v36, %v880_v6 }
 0xa0e   :  { %v1320_v12 = vmax.f32 %v886_v5, 0.0 }
 0xa0f   :  { %4470 = vmatpush3.bf16.xpose.msk.msra.mxu0 %vm5301_vm6, %v4468_v8  ;;  %v1319_v16 = vmax.f32 %v881_v9, 0.0  ;;  %v3903_v17 = vpop.f32.mrb[52].mxu0 }
 0xa10   :  { %4471 = vmatprep.subr.bf16.mxu0 %v6120_v7  ;;  %v896_v18 = vadd.f32 %v5580_v36, %v3903_v17  ;;  %v890_v22 = vpop.f32.mrb[53].mxu0 }
 0xa11   :  { %v4472_v11 = vpack.c.bf16 %v1320_v12, %v1319_v16  ;;  %v891_v57 = vadd.f32 %v5580_v36, %v890_v22 }
 0xa12   :  { %v1322_v26 = vmax.f32 %v896_v18, 0.0 }
 0xa13   :  { %v1321_v27 = vmax.f32 %v891_v57, 0.0  ;;  %v3906_v28 = vpop.f32.mrb[54].mxu0 }
 0xa14   :  { %v906_v29 = vadd.f32 %v5580_v36, %v3906_v28  ;;  %v900_v30 = vpop.f32.mrb[55].mxu0 }
 0xa15   :  { %v4476_v31 = vpack.c.bf16 %v1322_v26, %v1321_v27  ;;  %v901_v34 = vadd.f32 %v5580_v36, %v900_v30 }
 0xa16   :  { %v1324_v35 = vmax.f32 %v906_v29, 0.0 }
 0xa17   :  { %4474 = vmatpush3.bf16.xpose.msk.msra.mxu0 %vm5301_vm6, %v4472_v11  ;;  %v1323_v23 = vmax.f32 %v901_v34, 0.0  ;;  %v3909_v37 = vpop.f32.mrb[56].mxu0 }
 0xa18   :  { %4475 = vmatprep.subr.bf16.mxu0 %v6120_v7  ;;  %v916_v41 = vadd.f32 %v5580_v36, %v3909_v37  ;;  %v910_v42 = vpop.f32.mrb[57].mxu0 }
 0xa19   :  { %v4480_v60 = vpack.c.bf16 %v1324_v35, %v1323_v23  ;;  %v911_v44 = vadd.f32 %v5580_v36, %v910_v42 }
 0xa1a   :  { %v1326_v45 = vmax.f32 %v916_v41, 0.0 }
 0xa1b   :  { %v1325_v46 = vmax.f32 %v911_v44, 0.0  ;;  %v3912_v50 = vpop.f32.mrb[58].mxu0 }
 0xa1c   :  { %v926_v51 = vadd.f32 %v5580_v36, %v3912_v50  ;;  %v920_v52 = vpop.f32.mrb[59].mxu0 }
 0xa1d   :  { %v4484_v49 = vpack.c.bf16 %v1326_v45, %v1325_v46  ;;  %v921_v53 = vadd.f32 %v5580_v36, %v920_v52 }
 0xa1e   :  { %v1328_v56 = vmax.f32 %v926_v51, 0.0 }
 0xa1f   :  { %4478 = vmatpush3.bf16.xpose.msk.msra.mxu0 %vm5301_vm6, %v4476_v31  ;;  %v1327_v58 = vmax.f32 %v921_v53, 0.0  ;;  %v3915_v62 = vpop.f32.mrb[60].mxu0 }
 0xa20   :  { %4479 = vmatprep.subr.bf16.mxu0 %v6120_v7  ;;  %v936_v63 = vadd.f32 %v5580_v36, %v3915_v62  ;;  %v930_v1 = vpop.f32.mrb[61].mxu0 }
 0xa21   :  { %v4488_v4 = vpack.c.bf16 %v1328_v56, %v1327_v58  ;;  %v931_v5 = vadd.f32 %v5580_v36, %v930_v1 }
 0xa22   :  { %v1330_v6 = vmax.f32 %v936_v63, 0.0 }
 0xa23   :  { %v1329_v8 = vmax.f32 %v931_v5, 0.0  ;;  %v3918_v9 = vpop.f32.mrb[62].mxu0 }
 0xa24   :  { %v946_v12 = vadd.f32 %v5580_v36, %v3918_v9  ;;  %v940_v16 = vpop.f32.mrb[63].mxu0 }
 0xa25   :  { %v4492_v17 = vpack.c.bf16 %v1330_v6, %v1329_v8  ;;  %v941_v18 = vadd.f32 %v5580_v36, %v940_v16 }
 0xa26   :  { %v1332_v22 = vmax.f32 %v946_v12, 0.0 }
 0xa27   :  { %4482 = vmatpush3.bf16.xpose.msk.msra.mxu0 %vm5301_vm6, %v4480_v60  ;;  %v1331_v11 = vmax.f32 %v941_v18, 0.0  ;;  %v3921_v57 = vpop.f32.mrb[64].mxu0 }
 0xa28   :  { %4483 = vmatprep.subr.bf16.mxu0 %v6120_v7  ;;  %v956_v26 = vadd.f32 %v5580_v36, %v3921_v57  ;;  %v950_v27 = vpop.f32.mrb[65].mxu0 }
 0xa29   :  { %v4496_v28 = vpack.c.bf16 %v1332_v22, %v1331_v11  ;;  %v951_v29 = vadd.f32 %v5580_v36, %v950_v27 }
 0xa2a   :  { %v1334_v30 = vmax.f32 %v956_v26, 0.0 }
 0xa2b   :  { %v1333_v31 = vmax.f32 %v951_v29, 0.0  ;;  %v3924_v34 = vpop.f32.mrb[66].mxu0 }
 0xa2c   :  { %v966_v35 = vadd.f32 %v5580_v36, %v3924_v34  ;;  %v960_v23 = vpop.f32.mrb[67].mxu0 }
 0xa2d   :  { %v5674_v37 = vpack.c.bf16 %v1334_v30, %v1333_v31  ;;  %v961_v41 = vadd.f32 %v5580_v36, %v960_v23  ;;  %v1929_v30 = vsub.f32 1.0, %v5272_v19 }
 0xa2e   :  { %v1336_v42 = vmax.f32 %v966_v35, 0.0 }
 0xa2f   :  { %4486 = vmatpush3.bf16.xpose.msk.msra.mxu0 %vm5301_vm6, %v4484_v49  ;;  %v1335_v60 = vmax.f32 %v961_v41, 0.0  ;;  %v3927_v44 = vpop.f32.mrb[68].mxu0  ;;  %v1935_v41 = vmul.f32 %v5272_v19, %v5005_v0 }
 0xa30   :  { %4487 = vmatprep.subr.bf16.mxu0 %v6120_v7  ;;  %v976_v46 = vadd.f32 %v5580_v36, %v3927_v44  ;;  %v970_v49 = vpop.f32.mrb[69].mxu0 }
 0xa31   :  { %v5677_v45 = vpack.c.bf16 %v1336_v42, %v1335_v60  ;;  %v971_v52 = vadd.f32 %v5580_v36, %v970_v49 }
 0xa32   :  { %v1338_v51 = vmax.f32 %v976_v46, 0.0 }
 0xa33   :  { %v3930_v50 = vpop.f32.mrb[70].mxu0  ;;  %v1337_v63 = vmax.f32 %v971_v52, 0.0 }
 0xa34   :  { %v986_v53 = vadd.f32 %v5580_v36, %v3930_v50  ;;  %v980_v56 = vpop.f32.mrb[71].mxu0 }
 0xa35   :  { %v981_v58 = vadd.f32 %v5580_v36, %v980_v56  ;;  %v5688_v12 = vpack.c.bf16 %v1338_v51, %v1337_v63 }
 0xa36   :  { %v1340_v1 = vmax.f32 %v986_v53, 0.0 }
 0xa37   :  { %4490 = vmatpush3.bf16.xpose.msk.msra.mxu0 %vm5301_vm6, %v4488_v4  ;;  %v3933_v62 = vpop.f32.mrb[72].mxu0  ;;  %v1339_v6 = vmax.f32 %v981_v58, 0.0 }
 0xa38   :  { %4491 = vmatprep.subr.bf16.mxu0 %v6120_v7  ;;  %v996_v4 = vadd.f32 %v5580_v36, %v3933_v62  ;;  %v990_v5 = vpop.f32.mrb[73].mxu0 }
 0xa39   :  { %v991_v8 = vadd.f32 %v5580_v36, %v990_v5  ;;  %v5691_v22 = vpack.c.bf16 %v1340_v1, %v1339_v6 }
 0xa3a   :  { %v1342_v16 = vmax.f32 %v996_v4, 0.0 }
 0xa3b   :  { %v1341_v11 = vmax.f32 %v991_v8, 0.0 }
 0xa3d   :  { %v5696_v31 = vpack.c.bf16 %v1342_v16, %v1341_v11 }
 0xa3f   :  { %4494 = vmatpush3.bf16.xpose.msk.msra.mxu0 %vm5301_vm6, %v4492_v17 }
 0xa40   :  { %4495 = vmatprep.subr.bf16.mxu0 %v6120_v7 }
 0xa47   :  { %4498 = vmatpush3.bf16.xpose.msk.msra.mxu0 %vm5301_vm6, %v4496_v28 }
 0xa48   :  { %4531 = vmatprep.subr.bf16.mxu0 %v6120_v7 }
 0xa5f   :  { %v3936_v9 = vpop.f32.mrb[74].mxu0 }
 0xa60   :  { %v1006_v17 = vadd.f32 %v5580_v36, %v3936_v9  ;;  %v1000_v18 = vpop.f32.mrb[75].mxu0 }
 0xa61   :  { %v1001_v57 = vadd.f32 %v5580_v36, %v1000_v18 }
 0xa62   :  { %v1344_v27 = vmax.f32 %v1006_v17, 0.0 }
 0xa63   :  { %v3939_v26 = vpop.f32.mrb[76].mxu0  ;;  %v1343_v34 = vmax.f32 %v1001_v57, 0.0 }
 0xa64   :  { %v1016_v28 = vadd.f32 %v5580_v36, %v3939_v26  ;;  %v1010_v29 = vpop.f32.mrb[77].mxu0 }
 0xa65   :  { %v1011_v35 = vadd.f32 %v5580_v36, %v1010_v29  ;;  %v5702_v50 = vpack.c.bf16 %v1344_v27, %v1343_v34 }
 0xa66   :  { %v1346_v60 = vmax.f32 %v1016_v28, 0.0 }
 0xa67   :  { %v3942_v23 = vpop.f32.mrb[78].mxu0  ;;  %v1345_v51 = vmax.f32 %v1011_v35, 0.0 }
 0xa68   :  { %v1026_v44 = vadd.f32 %v5580_v36, %v3942_v23  ;;  %v1020_v46 = vpop.f32.mrb[79].mxu0 }
 0xa69   :  { %v1021_v52 = vadd.f32 %v5580_v36, %v1020_v46  ;;  %v5706_v1 = vpack.c.bf16 %v1346_v60, %v1345_v51 }
 0xa6a   :  { %v1348_v56 = vmax.f32 %v1026_v44, 0.0 }
 0xa6b   :  { %v3945_v53 = vpop.f32.mrb[80].mxu0  ;;  %v1347_v0 = vmax.f32 %v1021_v52, 0.0 }
 0xa6c   :  { %v1036_v58 = vadd.f32 %v5580_v36, %v3945_v53  ;;  %v1030_v62 = vpop.f32.mrb[81].mxu0 }
 0xa6d   :  { %v1031_v19 = vadd.f32 %v5580_v36, %v1030_v62  ;;  %v5710_v5 = vpack.c.bf16 %v1348_v56, %v1347_v0 }
 0xa6e   :  { %v1350_v4 = vmax.f32 %v1036_v58, 0.0 }
 0xa6f   :  { %v1349_v6 = vmax.f32 %v1031_v19, 0.0  ;;  %v3948_v9 = vpop.f32.mrb[82].mxu0 }
 0xa70   :  { %v1046_v16 = vadd.f32 %v5580_v36, %v3948_v9  ;;  %v1040_v17 = vpop.f32.mrb[83].mxu0 }
 0xa71   :  { %v5712_v8 = vpack.c.bf16 %v1350_v4, %v1349_v6  ;;  %v1041_v11 = vadd.f32 %v5580_v36, %v1040_v17 }
 0xa72   :  { %v1352_v18 = vmax.f32 %v1046_v16, 0.0 }
 0xa73   :  { %v1351_v57 = vmax.f32 %v1041_v11, 0.0  ;;  %v3951_v27 = vpop.f32.mrb[84].mxu0 }
 0xa74   :  { %v1056_v28 = vadd.f32 %v5580_v36, %v3951_v27  ;;  %v1050_v29 = vpop.f32.mrb[85].mxu0 }
 0xa75   :  { %v5716_v26 = vpack.c.bf16 %v1352_v18, %v1351_v57  ;;  %v1051_v34 = vadd.f32 %v5580_v36, %v1050_v29 }
 0xa77   :  { %v1353_v35 = vmax.f32 %v1051_v34, 0.0 }
 0xa7c   :  { %v1932_v42 = vpop.permute.xlu1 %1931 }
 0xa7d   :  { %v1934_v49 = vmul.f32 %v1932_v42, %v1929_v30  ;;  %v1354_v30 = vmax.f32 %v1056_v28, 0.0 }
 0xa7f   :  { %v1936_v63 = vadd.f32 %v1935_v41, %v1934_v49  ;;  %v5720_v23 = vpack.c.bf16 %v1354_v30, %v1353_v35  ;;  %v3954_v41 = vpop.f32.mrb[86].mxu0 }
 0xa80   :  { %v1066_v42 = vadd.f32 %v5580_v36, %v3954_v41  ;;  %v1060_v60 = vpop.f32.mrb[87].mxu0 }
 0xa81   :  { %1938 = vrot.lane.b32.xlu0 %v1936_v63, %s4773_s9  ;;  %v1061_v46 = vadd.f32 %v5580_v36, %v1060_v60  ;;  %v3957_v52 = vpop.f32.mrb[88].mxu0 }
 0xa82   :  { %v1356_v44 = vmax.f32 %v1066_v42, 0.0  ;;  %v1076_v53 = vadd.f32 %v5580_v36, %v3957_v52  ;;  %v1070_v56 = vpop.f32.mrb[89].mxu0 }
 0xa83   :  { %v1355_v49 = vmax.f32 %v1061_v46, 0.0  ;;  %v1071_v62 = vadd.f32 %v5580_v36, %v1070_v56  ;;  %v3960_v19 = vpop.f32.mrb[90].mxu0 }
 0xa84   :  { %v1358_v58 = vmax.f32 %v1076_v53, 0.0  ;;  %v1086_v4 = vadd.f32 %v5580_v36, %v3960_v19  ;;  %v1080_v6 = vpop.f32.mrb[91].mxu0 }
 0xa85   :  { %v5724_v51 = vpack.c.bf16 %v1356_v44, %v1355_v49  ;;  %v1357_v63 = vmax.f32 %v1071_v62, 0.0  ;;  %v1081_v16 = vadd.f32 %v5580_v36, %v1080_v6  ;;  %v3963_v17 = vpop.f32.mrb[92].mxu0 }
 0xa86   :  { %v1360_v9 = vmax.f32 %v1086_v4, 0.0  ;;  %v1096_v18 = vadd.f32 %v5580_v36, %v3963_v17  ;;  %v1090_v11 = vpop.f32.mrb[93].mxu0 }
 0xa87   :  { %v5728_v0 = vpack.c.bf16 %v1358_v58, %v1357_v63  ;;  %v1359_v57 = vmax.f32 %v1081_v16, 0.0  ;;  %v1091_v27 = vadd.f32 %v5580_v36, %v1090_v11  ;;  %v3966_v28 = vpop.f32.mrb[94].mxu0 }
 0xa88   :  { %v1362_v29 = vmax.f32 %v1096_v18, 0.0  ;;  %v1106_v30 = vadd.f32 %v5580_v36, %v3966_v28  ;;  %v1100_v41 = vpop.f32.mrb[95].mxu0 }
 0xa89   :  { %v5735_v34 = vpack.c.bf16 %v1360_v9, %v1359_v57  ;;  %v1361_v35 = vmax.f32 %v1091_v27, 0.0  ;;  %v1101_v44 = vadd.f32 %v5580_v36, %v1100_v41 }
 0xa8a   :  { %v1364_v60 = vmax.f32 %v1106_v30, 0.0 }
 0xa8b   :  { %v5737_v42 = vpack.c.bf16 %v1362_v29, %v1361_v35  ;;  %v3969_v46 = vpop.f32.mrb[96].mxu0  ;;  %v1363_v53 = vmax.f32 %v1101_v44, 0.0 }
 0xa8c   :  { %v1116_v49 = vadd.f32 %v5580_v36, %v3969_v46  ;;  %v1110_v52 = vpop.f32.mrb[97].mxu0 }
 0xa8d   :  { %v1111_v56 = vadd.f32 %v5580_v36, %v1110_v52  ;;  %v5743_v4 = vpack.c.bf16 %v1364_v60, %v1363_v53 }
 0xa8e   :  { %v1366_v62 = vmax.f32 %v1116_v49, 0.0 }
 0xa8f   :  { %v3972_v58 = vpop.f32.mrb[98].mxu0  ;;  %v1365_v6 = vmax.f32 %v1111_v56, 0.0 }
 0xa90   :  { %v1126_v63 = vadd.f32 %v5580_v36, %v3972_v58  ;;  %v1120_v19 = vpop.f32.mrb[99].mxu0 }
 0xa91   :  { %v1121_v9 = vadd.f32 %v5580_v36, %v1120_v19  ;;  %v5747_v57 = vpack.c.bf16 %v1366_v62, %v1365_v6 }
 0xa92   :  { %v1368_v17 = vmax.f32 %v1126_v63, 0.0 }
 0xa93   :  { %v3975_v16 = vpop.f32.mrb[100].mxu0  ;;  %v1367_v27 = vmax.f32 %v1121_v9, 0.0 }
 0xa94   :  { %v1136_v18 = vadd.f32 %v5580_v36, %v3975_v16  ;;  %v1130_v11 = vpop.f32.mrb[101].mxu0 }
 0xa95   :  { %v1131_v28 = vadd.f32 %v5580_v36, %v1130_v11  ;;  %v5751_v60 = vpack.c.bf16 %v1368_v17, %v1367_v27 }
 0xa96   :  { %v1370_v30 = vmax.f32 %v1136_v18, 0.0 }
 0xa97   :  { %v3978_v29 = vpop.f32.mrb[102].mxu0  ;;  %v1369_v44 = vmax.f32 %v1131_v28, 0.0 }
 0xa98   :  { %v1146_v35 = vadd.f32 %v5580_v36, %v3978_v29  ;;  %v1140_v41 = vpop.f32.mrb[103].mxu0 }
 0xa99   :  { %v1141_v46 = vadd.f32 %v5580_v36, %v1140_v41  ;;  %v5755_v58 = vpack.c.bf16 %v1370_v30, %v1369_v44 }
 0xa9a   :  { %v1372_v52 = vmax.f32 %v1146_v35, 0.0 }
 0xa9b   :  { %v3981_v49 = vpop.f32.mrb[104].mxu0  ;;  %6126 = vst [vmem:[#allocation9_spill] sm:$0xff] %v5755_v58  ;;  %v1371_v62 = vmax.f32 %v1141_v46, 0.0 }
 0xa9c   :  { %v1156_v53 = vadd.f32 %v5580_v36, %v3981_v49  ;;  %v1150_v56 = vpop.f32.mrb[105].mxu0 }
 0xa9d   :  { %v1151_v63 = vadd.f32 %v5580_v36, %v1150_v56  ;;  %v5759_v17 = vpack.c.bf16 %v1372_v52, %v1371_v62 }
 0xa9e   :  { %v1374_v6 = vmax.f32 %v1156_v53, 0.0 }
 0xa9f   :  { %v3984_v19 = vpop.f32.mrb[106].mxu0  ;;  %6127 = vst [vmem:[#allocation10_spill] sm:$0xff] %v5759_v17  ;;  %v1373_v18 = vmax.f32 %v1151_v63, 0.0 }
 0xaa0   :  { %v1166_v9 = vadd.f32 %v5580_v36, %v3984_v19  ;;  %v1160_v16 = vpop.f32.mrb[107].mxu0 }
 0xaa1   :  { %v1161_v11 = vadd.f32 %v5580_v36, %v1160_v16  ;;  %v5763_v30 = vpack.c.bf16 %v1374_v6, %v1373_v18 }
 0xaa2   :  { %v1376_v28 = vmax.f32 %v1166_v9, 0.0 }
 0xaa3   :  { %v3987_v27 = vpop.f32.mrb[108].mxu0  ;;  %6128 = vst [vmem:[#allocation11_spill] sm:$0xff] %v5763_v30  ;;  %v1375_v41 = vmax.f32 %v1161_v11, 0.0 }
 0xaa4   :  { %v1176_v29 = vadd.f32 %v5580_v36, %v3987_v27  ;;  %v1170_v35 = vpop.f32.mrb[109].mxu0 }
 0xaa5   :  { %v1171_v44 = vadd.f32 %v5580_v36, %v1170_v35  ;;  %v5767_v52 = vpack.c.bf16 %v1376_v28, %v1375_v41 }
 0xaa6   :  { %v1378_v49 = vmax.f32 %v1176_v29, 0.0 }
 0xaa7   :  { %v3990_v46 = vpop.f32.mrb[110].mxu0  ;;  %6129 = vst [vmem:[#allocation12_spill] sm:$0xff] %v5767_v52  ;;  %v1377_v62 = vmax.f32 %v1171_v44, 0.0 }
 0xaa8   :  { %v1186_v53 = vadd.f32 %v5580_v36, %v3990_v46  ;;  %v1180_v56 = vpop.f32.mrb[111].mxu0 }
 0xaa9   :  { %v1181_v63 = vadd.f32 %v5580_v36, %v1180_v56  ;;  %v5771_v6 = vpack.c.bf16 %v1378_v49, %v1377_v62 }
 0xaaa   :  { %v1380_v9 = vmax.f32 %v1186_v53, 0.0 }
 0xaab   :  { %v3993_v19 = vpop.f32.mrb[112].mxu0  ;;  %6130 = vst [vmem:[#allocation13_spill] sm:$0xff] %v5771_v6  ;;  %v1379_v18 = vmax.f32 %v1181_v63, 0.0 }
 0xaac   :  { %v1196_v16 = vadd.f32 %v5580_v36, %v3993_v19  ;;  %v1190_v27 = vpop.f32.mrb[113].mxu0 }
 0xaad   :  { %v1191_v11 = vadd.f32 %v5580_v36, %v1190_v27  ;;  %v5774_v29 = vpack.c.bf16 %v1380_v9, %v1379_v18 }
 0xaae   :  { %v1382_v35 = vmax.f32 %v1196_v16, 0.0 }
 0xaaf   :  { %6131 = vst [vmem:[#allocation14_spill] sm:$0xff] %v5774_v29  ;;  %v1381_v46 = vmax.f32 %v1191_v11, 0.0  ;;  %v3996_v28 = vpop.f32.mrb[114].mxu0 }
 0xab0   :  { %v1206_v41 = vadd.f32 %v5580_v36, %v3996_v28  ;;  %v1200_v44 = vpop.f32.mrb[115].mxu0 }
 0xab1   :  { %v5776_v7 = vpack.c.bf16 %v1382_v35, %v1381_v46  ;;  %v1201_v53 = vadd.f32 %v5580_v36, %v1200_v44 }
 0xab2   :  { %v1384_v56 = vmax.f32 %v1206_v41, 0.0 }
 0xab3   :  { %v1383_v19 = vmax.f32 %v1201_v53, 0.0  ;;  %v3999_v49 = vpop.f32.mrb[116].mxu0 }
 0xab4   :  { %v1216_v62 = vadd.f32 %v5580_v36, %v3999_v49  ;;  %v1210_v63 = vpop.f32.mrb[117].mxu0  ;;  %v1953_v49 = vlaneseq }
 0xab5   :  { %v5780_v21 = vpack.c.bf16 %v1384_v56, %v1383_v19  ;;  %v1211_v9 = vadd.f32 %v5580_v36, %v1210_v63  ;;  %v4775_v56 = vmov 1983009808  }
 0xab6   :  { %v1386_v16 = vmax.f32 %v1216_v62, 0.0  ;;  %v1951_v19 = vunpack.c.l.s4 %v4775_v56  ;;  %v5792_v63 = vshrl.u32 %v1953_v49, 7 }
 0xab7   :  { %v1385_v27 = vmax.f32 %v1211_v9, 0.0 }
 0xab8   :  { %v1952_v62 = vunpack.c.0.s8 %v1951_v19 }
 0xab9   :  { %v5784_v18 = vpack.c.bf16 %v1386_v16, %v1385_v27  ;;  %v4776_v16 = vmov 1934713408   ;;  %v4642_v27 = vld [vmem:[#allocation2] ss:$16 sps:$4 sm:$0xff]  }
 0xaba   :  { %v1983_v9 = vunpack.c.l.s4 %v4776_v16 }
 0xad1   :  { %v4002_v11 = vpop.f32.mrb[118].mxu0 }
 0xad2   :  { %v1226_v35 = vadd.f32 %v5580_v36, %v4002_v11  ;;  %v1220_v46 = vpop.f32.mrb[119].mxu0  ;;  %v1984_v11 = vunpack.c.0.s8 %v1983_v9  ;;  %v6132_v9 = vmov 0.0  }
 0xad3   :  { %v1221_v28 = vadd.f32 %v5580_v36, %v1220_v46  ;;  %v1955_v36 = vsub.s32 %v1952_v62, %v5792_v63 }
 0xad4   :  { %v1388_v41 = vmax.f32 %v1226_v35, 0.0  ;;  %v4646_v35 = vld [vmem:[#allocation2 + $0x4] ss:$16 sps:$4 sm:$0xff]   ;;  %v1987_v56 = vsub.s32 %v1984_v11, %v5792_v63 }
 0xad5   :  { %v1387_v44 = vmax.f32 %v1221_v28, 0.0  ;;  %v1963_v6 = vrot.slane %v4646_v35, %v1955_v36 }
 0xad7   :  { %v5788_v53 = vpack.c.bf16 %v1388_v41, %v1387_v44  ;;  %v1956_v41 = vrot.slane %v4642_v27, %v1955_v36 }
 0xaf3   :  { %v1939_v29 = vpop.permute.xlu0 %1938 }
 0xaf4   :  { %1942 = vst.msk [vmem:[#allocation2 + $0x18] sm:$0xff] %vm1523_vm5, %v1939_v29  ;;  %1943 = vst.msk [vmem:[#allocation5] sm:$0xff] %vm1523_vm5, %v1939_v29 }
 0xafb   :  { %v4644_v46 = vld [vmem:[#allocation2 + $0x8] ss:$16 sps:$4 sm:$0xff]   ;;  %v4647_v28 = vld [vmem:[#allocation2 + $0xc] ss:$16 sps:$4 sm:$0xff]  }
 0xafc   :  { %v1972_v44 = vrot.slane %v4644_v46, %v1955_v36  ;;  %v1979_v52 = vrot.slane %v4647_v28, %v1955_v36 }
 0xafe   :  { %v1980_v30 = vcombine.low %v1956_v41, %v1972_v44  ;;  %v1981_v29 = vcombine.high %v1956_v41, %v1972_v44  ;;  %v1996_v19 = vcombine.low %v1963_v6, %v1979_v52  ;;  %v1997_v49 = vcombine.high %v1963_v6, %v1979_v52 }
 0xb00   :  { %v1988_v17 = vrot.slane %v1980_v30, %v1987_v56  ;;  %v5796_v58 = vrot.slane %v1981_v29, %v1987_v56  ;;  %v5798_v16 = vrot.slane %v1996_v19, %v1987_v56  ;;  %v5800_v62 = vrot.slane %v1997_v49, %v1987_v56 }
 0xb01   :  { %v6133_v30 = vmov 0.0|0.0  }
 0xb02   :  { %4100 = vmatmul.mubr.msk.f32.vlgmr.msra.gmra.mrb[20].mxu1 %vm1523_vm5, %v1988_v17  ;;  %v2013_v27 = vcombine.high %v5796_v58, %v6132_v9 }
 0xb03   :  { %4406 = vmatpush3.bf16.xpose.msk.msra.mxu1 %vm5301_vm6, %v5375_v20  ;;  %4134 = vmatprep.mubr.msk.f32.mxu1 %vm4770_vm4, %v6132_v9  ;;  %v2012_v20 = vcombine.high %v1988_v17, %v6132_v9 }
 0xb04   :  { %4205 = vmatmul.mubr.msk.f32.vlgmr.msra.gmra.mrb[120].mxu0 %vm1523_vm5, %v2013_v27  ;;  %4407 = vmatprep.subr.bf16.mxu1 %v6133_v30 }
 0xb05   :  { %4534 = vmatpush3.bf16.xpose.msk.msra.mxu0 %vm5301_vm6, %v5712_v8  ;;  %4274 = vmatprep.mubr.msk.f32.mxu0 %vm4770_vm4, %v6132_v9  ;;  %v6136_v8 = vld [vmem:[#allocation11_spill] sm:$0xff] }
 0xb06   :  { %4535 = vmatprep.subr.bf16.mxu0 %v6133_v30 }
 0xb0b   :  { %4410 = vmatpush3.bf16.xpose.msk.msra.mxu1 %vm5301_vm6, %v5390_v2  ;;  %v2014_v2 = vcombine.high %v5798_v16, %v6132_v9 }
 0xb0c   :  { %4411 = vmatprep.subr.bf16.mxu1 %v6133_v30 }
 0xb0d   :  { %4538 = vmatpush3.bf16.xpose.msk.msra.mxu0 %vm5301_vm6, %v5716_v26  ;;  %v6137_v26 = vld [vmem:[#allocation12_spill] sm:$0xff] }
 0xb0e   :  { %4539 = vmatprep.subr.bf16.mxu0 %v6133_v30 }
 0xb13   :  { %4414 = vmatpush3.bf16.xpose.msk.msra.mxu1 %vm5301_vm6, %v5402_v13  ;;  %v4778_v13 = vmov 0  }
 0xb14   :  { %4415 = vmatprep.subr.bf16.mxu1 %v6133_v30 }
 0xb15   :  { %4542 = vmatpush3.bf16.xpose.msk.msra.mxu0 %vm5301_vm6, %v5720_v23  ;;  %v6138_v23 = vld [vmem:[#allocation13_spill] sm:$0xff] }
 0xb16   :  { %4543 = vmatprep.subr.bf16.mxu0 %v6133_v30 }
 0xb1b   :  { %4418 = vmatpush3.bf16.xpose.msk.msra.mxu1 %vm5301_vm6, %v5417_v24 }
 0xb1c   :  { %4419 = vmatprep.subr.bf16.mxu1 %v6133_v30 }
 0xb1d   :  { %4546 = vmatpush3.bf16.xpose.msk.msra.mxu0 %vm5301_vm6, %v5724_v51 }
 0xb1e   :  { %4547 = vmatprep.subr.bf16.mxu0 %v6133_v30 }
 0xb23   :  { %4422 = vmatpush3.bf16.xpose.msk.msra.mxu1 %vm5301_vm6, %v5543_v59 }
 0xb24   :  { %4423 = vmatprep.subr.bf16.mxu1 %v6133_v30 }
 0xb25   :  { %4550 = vmatpush3.bf16.xpose.msk.msra.mxu0 %vm5301_vm6, %v5728_v0  ;;  %v6139_v0 = vld [vmem:[#allocation14_spill] sm:$0xff] }
 0xb26   :  { %4551 = vmatprep.subr.bf16.mxu0 %v6133_v30 }
 0xb2b   :  { %4426 = vmatpush3.bf16.xpose.msk.msra.mxu1 %vm5301_vm6, %v5555_v14 }
 0xb2c   :  { %4427 = vmatprep.subr.bf16.mxu1 %v6133_v30 }
 0xb2d   :  { %4554 = vmatpush3.bf16.xpose.msk.msra.mxu0 %vm5301_vm6, %v5735_v34 }
 0xb2e   :  { %4555 = vmatprep.subr.bf16.mxu0 %v6133_v30 }
 0xb33   :  { %4430 = vmatpush3.bf16.xpose.msk.msra.mxu1 %vm5301_vm6, %v5567_v25 }
 0xb34   :  { %4431 = vmatprep.subr.bf16.mxu1 %v6133_v30 }
 0xb35   :  { %4558 = vmatpush3.bf16.xpose.msk.msra.mxu0 %vm5301_vm6, %v5737_v42 }
 0xb36   :  { %4559 = vmatprep.subr.bf16.mxu0 %v6133_v30 }
 0xb3b   :  { %4434 = vmatpush3.bf16.xpose.msk.msra.mxu1 %vm5301_vm6, %v5584_v38 }
 0xb3c   :  { %4435 = vmatprep.subr.bf16.mxu1 %v6133_v30 }
 0xb3d   :  { %4562 = vmatpush3.bf16.xpose.msk.msra.mxu0 %vm5301_vm6, %v5743_v4 }
 0xb3e   :  { %4595 = vmatprep.subr.bf16.mxu0 %v6133_v30 }
 0xb42   :  { %4135 = vmatmul.mubr.msk.f32.vlgmr.msra.gmra.mrb[22].mxu1 %vm1523_vm5, %v2012_v20 }
 0xb43   :  { %4438 = vmatpush3.bf16.xpose.msk.msra.mxu1 %vm5301_vm6, %v5593_v48  ;;  %4169 = vmatprep.mubr.msk.f32.mxu1 %vm4770_vm4, %v6132_v9 }
 0xb44   :  { %4275 = vmatmul.mubr.msk.f32.vlgmr.msra.gmra.mrb[122].mxu0 %vm1523_vm5, %v2014_v2  ;;  %4439 = vmatprep.subr.bf16.mxu1 %v6133_v30 }
 0xb45   :  { %4598 = vmatpush3.bf16.xpose.msk.msra.mxu0 %vm5301_vm6, %v5776_v7  ;;  %4344 = vmatprep.mubr.msk.f32.mxu0 %vm4770_vm4, %v6132_v9  ;;  %v2015_v7 = vcombine.high %v5800_v62, %v6132_v9 }
 0xb46   :  { %4599 = vmatprep.subr.bf16.mxu0 %v6133_v30 }
 0xb4b   :  { %4442 = vmatpush3.bf16.xpose.msk.msra.mxu1 %vm5301_vm6, %v5597_v54  ;;  %v6007_v54 = vsub.s32 0, %v5792_v63 }
 0xb4c   :  { %4443 = vmatprep.subr.bf16.mxu1 %v6133_v30 }
 0xb4d   :  { %4602 = vmatpush3.bf16.xpose.msk.msra.mxu0 %vm5301_vm6, %v5780_v21  ;;  %v4777_v21 = vmov 1966171168  }
 0xb4e   :  { %4603 = vmatprep.subr.bf16.mxu0 %v6133_v30 }
 0xb53   :  { %4446 = vmatpush3.bf16.xpose.msk.msra.mxu1 %vm5301_vm6, %v5601_v3 }
 0xb54   :  { %4447 = vmatprep.subr.bf16.mxu1 %v6133_v30 }
 0xb55   :  { %4606 = vmatpush3.bf16.xpose.msk.msra.mxu0 %vm5301_vm6, %v5784_v18 }
 0xb56   :  { %4607 = vmatprep.subr.bf16.mxu0 %v6133_v30 }
 0xb5b   :  { %4450 = vmatpush3.bf16.xpose.msk.msra.mxu1 %vm5301_vm6, %v5605_v10 }
 0xb5c   :  { %4451 = vmatprep.subr.bf16.mxu1 %v6133_v30 }
 0xb5d   :  { %4610 = vmatpush3.bf16.xpose.msk.msra.mxu0 %vm5301_vm6, %v5788_v53 }
 0xb5e   :  { %4611 = vmatprep.subr.bf16.mxu0 %v6133_v30 }
 0xb63   :  { %4454 = vmatpush3.bf16.xpose.msk.msra.mxu1 %vm5301_vm6, %v5621_v32 }
 0xb64   :  { %4455 = vmatprep.subr.bf16.mxu1 %v6133_v30 }
 0xb65   :  { %4614 = vmatpush3.bf16.xpose.msk.msra.mxu0 %vm5301_vm6, %v4947_v33  ;;  %v2989_v33 = vunpack.c.l.s4 %v4777_v21 }
 0xb66   :  { %4615 = vmatprep.subr.bf16.mxu0 %v6133_v30 }
 0xb6b   :  { %4458 = vmatpush3.bf16.xpose.msk.msra.mxu1 %vm5301_vm6, %v5624_v39 }
 0xb6c   :  { %4459 = vmatprep.subr.bf16.mxu1 %v6133_v30 }
 0xb6d   :  { %4618 = vmatpush3.bf16.xpose.msk.msra.mxu0 %vm5301_vm6, %v4951_v40  ;;  %v2984_v40 = vld [vmem:[%s6110_s2] sm:$0xff]  ;;  %s4779_s2 = smov [#allocation5]  }
 0xb6e   :  { %4619 = vmatprep.subr.bf16.mxu0 %v6133_v30  ;;  %vm2985_vm7 = vcmp.gt.f32.partialorder %v2984_v40, 0.0  ;;  %s3238_s18 = sshll.u32 %s4779_s2, 4  ;;  %s3239_s18 = int_to_ptr.vmem [resolvable:$true] %s3238_s18 }
 0xb6f   :  { %v2986_v24 = vsel %vm2985_vm7, 1, %v4778_v13  ;;  %s4721_s19 = scalar_lea.vmem %s3239_s18, 128  ;;  %p4726_p1 = scmp.lt.s32.totalorder %s3239_s18, %s3239_s18 }
 0xb70   :  { %v2987_v51 = vcombine.high %v2986_v24, %v2986_v24  ;;  %p4722_p0 = scmp.ne.s32.totalorder %s3239_s18, %s4721_s19  ;;  %p4727_p2 = scmp.lt.s32.totalorder %s4721_s19, %s4721_s19 }
 0xb72   :  { %p4728_p3 = por %p4727_p2, %p4726_p1 }
 0xb73   :  { %4462 = vmatpush3.bf16.xpose.msk.msra.mxu1 %vm5301_vm6, %v5629_v15  ;;  %v6134_v15 = vld [vmem:[#allocation9_spill] sm:$0xff] }
 0xb74   :  { %4463 = vmatprep.subr.bf16.mxu1 %v6133_v30  ;;  %p4729_p4 = pnand %p4728_p3, %p4722_p0 }
 0xb75   :  { %4622 = vmatpush3.bf16.xpose.msk.msra.mxu0 %vm5301_vm6, %v4955_v47  ;;  %v2990_v47 = vunpack.c.0.s8 %v2989_v33 }
 0xb76   :  { %4623 = vmatprep.subr.bf16.mxu0 %v6133_v30 }
 0xb7b   :  { %4466 = vmatpush3.bf16.xpose.msk.msra.mxu1 %vm5301_vm6, %v5633_v61 }
 0xb7c   :  { %4499 = vmatprep.subr.bf16.mxu1 %v6133_v30 }
 0xb7d   :  { %4626 = vmatpush3.bf16.xpose.msk.msra.mxu0 %vm5301_vm6, %v4961_v55  ;;  %v5985_v55 = vsub.s32 %v2990_v47, %v5792_v63 }
 0xb7f   :  { %v2994_v59 = vrot.slane %v2986_v24, %v5985_v55  ;;  %v3001_v34 = vrot.slane %v2987_v51, %v5985_v55 }
 0xb81   :  { %v3002_v14 = vcombine.high %v2994_v59, %v2994_v59  ;;  %v3010_v38 = vrot.slane %v2994_v59, %v5985_v55  ;;  %v3003_v42 = vcombine.high %v3001_v34, %v3001_v34  ;;  %v3017_v20 = vrot.slane %v3001_v34, %v5985_v55 }
 0xb82   :  { %4170 = vmatmul.mubr.msk.f32.vlgmr.msra.gmra.mrb[24].mxu1 %vm1523_vm5, %v5796_v58 }
 0xb83   :  { %4502 = vmatpush3.bf16.xpose.msk.msra.mxu1 %vm5301_vm6, %v5674_v37  ;;  %4239 = vmatprep.mubr.msk.f32.mxu1 %vm4770_vm4, %v6132_v9  ;;  %v3024_v25 = vrot.slane %v3002_v14, %v5985_v55  ;;  %vm3036_vm8 = vcmp.ne.s32.totalorder %v3010_v38, 0  ;;  %v3031_v4 = vrot.slane %v3003_v42, %v5985_v55  ;;  %v3032_v35 = vcombine.high %v3010_v38, %v3010_v38 }
 0xb84   :  { %4345 = vmatmul.mubr.msk.f32.vlgmr.msra.gmra.mrb[124].mxu0 %vm1523_vm5, %v2015_v7  ;;  %4503 = vmatprep.subr.bf16.mxu1 %v6133_v30  ;;  %v3044_v3 = vsel %vm3036_vm8, 1, %v4778_v13 }
 0xb85   :  { %v3034_v48 = vcombine.high %v3024_v25, %v3024_v25  ;;  %v3055_v32 = vrot.slane %v3044_v3, %v6007_v54  ;;  %vm3037_vm12 = vcmp.ne.s32.totalorder %v3024_v25, 0  ;;  %vm3041_vm13 = vcmp.ne.s32.totalorder %v3031_v4, 0 }
 0xb86   :  { %v3035_v46 = vcombine.high %v3031_v4, %v3031_v4  ;;  %vm3038_vm0 = vcmp.ne.s32.totalorder %v3032_v35, 0 }
 0xb87   :  { %vm3039_vm9 = vcmp.ne.s32.totalorder %v3034_v48, 0  ;;  %vm3084_vm10 = vcmp.eq.s32.totalorder %v3055_v32, 1  ;;  %v3046_v28 = vsel %vm3038_vm0, 1, %v4778_v13 }
 0xb88   :  { %v3047_v10 = vsel %vm3039_vm9, 1, %v4778_v13  ;;  %vm3043_vm1 = vcmp.ne.s32.totalorder %v3035_v46, 0  ;;  %v3063_v44 = vrot.slane %v3046_v28, %v6007_v54 }
 0xb89   :  { %v3067_v39 = vrot.slane %v3047_v10, %v6007_v54  ;;  %v3051_v41 = vsel %vm3043_vm1, 1, %v4778_v13 }
 0xb8a   :  { %v3083_v56 = vrot.slane %v3051_v41, %v6007_v54  ;;  %vm3086_vm3 = vcmp.eq.s32.totalorder %v3063_v44, 1 }
 0xb8b   :  { %4506 = vmatpush3.bf16.xpose.msk.msra.mxu1 %vm5301_vm6, %v5677_v45  ;;  %vm3087_vm11 = vcmp.eq.s32.totalorder %v3067_v39, 1 }
 0xb8c   :  { %4507 = vmatprep.subr.bf16.mxu1 %v6133_v30 }
 0xb93   :  { %4510 = vmatpush3.bf16.xpose.msk.msra.mxu1 %vm5301_vm6, %v5688_v12 }
 0xb94   :  { %4511 = vmatprep.subr.bf16.mxu1 %v6133_v30 }
 0xb9b   :  { %4514 = vmatpush3.bf16.xpose.msk.msra.mxu1 %vm5301_vm6, %v5691_v22 }
 0xb9c   :  { %4515 = vmatprep.subr.bf16.mxu1 %v6133_v30 }
 0xba3   :  { %4518 = vmatpush3.bf16.xpose.msk.msra.mxu1 %vm5301_vm6, %v5696_v31 }
 0xba4   :  { %4519 = vmatprep.subr.bf16.mxu1 %v6133_v30 }
 0xbab   :  { %4522 = vmatpush3.bf16.xpose.msk.msra.mxu1 %vm5301_vm6, %v5702_v50 }
 0xbac   :  { %4523 = vmatprep.subr.bf16.mxu1 %v6133_v30 }
 0xbb3   :  { %4526 = vmatpush3.bf16.xpose.msk.msra.mxu1 %vm5301_vm6, %v5706_v1  ;;  %v6135_v1 = vld [vmem:[#allocation10_spill] sm:$0xff] }
 0xbb4   :  { %4527 = vmatprep.subr.bf16.mxu1 %v6133_v30 }
 0xbbb   :  { %4530 = vmatpush3.bf16.xpose.msk.msra.mxu1 %vm5301_vm6, %v5710_v5 }
 0xbbc   :  { %4563 = vmatprep.subr.bf16.mxu1 %v6133_v30 }
 0xbc2   :  { %4240 = vmatmul.mubr.msk.f32.vlgmr.msra.gmra.mrb[26].mxu1 %vm1523_vm5, %v5798_v16 }
 0xbc3   :  { %4566 = vmatpush3.bf16.xpose.msk.msra.mxu1 %vm5301_vm6, %v5747_v57  ;;  %4309 = vmatprep.mubr.msk.f32.mxu1 %vm4770_vm4, %v6132_v9  ;;  %v3045_v57 = vsel %vm3037_vm12, 1, %v4778_v13  ;;  %vm3091_vm4 = vcmp.eq.s32.totalorder %v3083_v56, 1 }
 0xbc4   :  { %4567 = vmatprep.subr.bf16.mxu1 %v6133_v30  ;;  %v3059_v58 = vrot.slane %v3045_v57, %v6007_v54 }
 0xbc6   :  { %vm3085_vm14 = vcmp.eq.s32.totalorder %v3059_v58, 1 }
 0xbcb   :  { %4570 = vmatpush3.bf16.xpose.msk.msra.mxu1 %vm5301_vm6, %v5751_v60  ;;  %v3049_v60 = vsel %vm3041_vm13, 1, %v4778_v13 }
 0xbcc   :  { %4571 = vmatprep.subr.bf16.mxu1 %v6133_v30  ;;  %v3075_v17 = vrot.slane %v3049_v60, %v6007_v54 }
 0xbce   :  { %vm3089_vm15 = vcmp.eq.s32.totalorder %v3075_v17, 1 }
 0xbd3   :  { %4574 = vmatpush3.bf16.xpose.msk.msra.mxu1 %vm5301_vm6, %v6134_v15 }
 0xbd4   :  { %4575 = vmatprep.subr.bf16.mxu1 %v6133_v30 }
 0xbd5   :  { %v2133_v61 = vpop.f32.mrb[20].mxu1 }
 0xbd6   :  { %v6018_v37 = vsel %vm3084_vm10, %v2133_v61, -1e+09  ;;  %v4101_v45 = vpop.f32.mrb[21].mxu1 }
 0xbd7   :  { %v2496_v12 = vpop.f32.mrb[120].mxu0  ;;  %v3100_v22 = vsel %vm1422_vm2, %v6018_v37, -inf }
 0xbd8   :  { %v6022_v31 = vsel %vm3087_vm11, %v2496_v12, -1e+09  ;;  %v4206_v50 = vpop.f32.mrb[121].mxu0  ;;  %3101 = vmax.xlane.f32.xlu1 %v3100_v22 }
 0xbd9   :  { %v3109_v5 = vsel %vm1422_vm2, %v6022_v31, -inf }
 0xbdb   :  { %4578 = vmatpush3.bf16.xpose.msk.msra.mxu1 %vm5301_vm6, %v6135_v1 }
 0xbdc   :  { %3110 = vmax.xlane.f32.xlu1 %v3109_v5  ;;  %4579 = vmatprep.subr.bf16.mxu1 %v6133_v30 }
 0xbe3   :  { %4582 = vmatpush3.bf16.xpose.msk.msra.mxu1 %vm5301_vm6, %v6136_v8 }
 0xbe4   :  { %4583 = vmatprep.subr.bf16.mxu1 %v6133_v30 }
 0xbeb   :  { %4586 = vmatpush3.bf16.xpose.msk.msra.mxu1 %vm5301_vm6, %v6137_v26 }
 0xbec   :  { %4587 = vmatprep.subr.bf16.mxu1 %v6133_v30 }
 0xbf3   :  { %4590 = vmatpush3.bf16.xpose.msk.msra.mxu1 %vm5301_vm6, %v6138_v23 }
 0xbf4   :  { %4591 = vmatprep.subr.bf16.mxu1 %v6133_v30 }
 0xbfb   :  { %4594 = vmatpush3.bf16.xpose.msk.msra.mxu1 %vm5301_vm6, %v6139_v0 }
 0xc02   :  { %4310 = vmatmul.mubr.msk.f32.vlgmr.msra.gmra.mrb[28].mxu1 %vm1523_vm5, %v5800_v62  ;;  %vm3040_vm5 = vcmp.ne.s32.totalorder %v3017_v20, 0 }
 0xc03   :  { %v3048_v2 = vsel %vm3040_vm5, 1, %v4778_v13 }
 0xc04   :  { %v3071_v7 = vrot.slane %v3048_v2, %v6007_v54 }
 0xc06   :  { %vm3088_vm6 = vcmp.eq.s32.totalorder %v3071_v7, 1 }
 0xc15   :  { %v2254_v43 = vpop.f32.mrb[22].mxu1 }
 0xc16   :  { %v3093_v52 = vsel %vm3085_vm14, %v2254_v43, -1e+09  ;;  %v4136_v6 = vpop.f32.mrb[23].mxu1 }
 0xc17   :  { %v2738_v18 = vpop.f32.mrb[122].mxu0  ;;  %v3103_v53 = vsel %vm1422_vm2, %v3093_v52, -inf }
 0xc18   :  { %v3097_v63 = vsel %vm3089_vm15, %v2738_v18, -1e+09  ;;  %v4276_v36 = vpop.f32.mrb[123].mxu0  ;;  %3104 = vmax.xlane.f32.xlu0 %v3103_v53 }
 0xc19   :  { %v3115_v11 = vsel %vm1422_vm2, %v3097_v63, -inf }
 0xc1a   :  { %3116 = vmax.xlane.f32.xlu1 %v3115_v11 }
 0xc55   :  { %v2375_v29 = vpop.f32.mrb[24].mxu1 }
 0xc56   :  { %v3094_v19 = vsel %vm3086_vm3, %v2375_v29, -1e+09  ;;  %v4171_v49 = vpop.f32.mrb[25].mxu1 }
 0xc57   :  { %v2980_v16 = vpop.f32.mrb[124].mxu0  ;;  %v3106_v62 = vsel %vm1422_vm2, %v3094_v19, -inf }
 0xc58   :  { %v3099_v9 = vsel %vm3091_vm4, %v2980_v16, -1e+09  ;;  %v4346_v27 = vpop.f32.mrb[125].mxu0  ;;  %3107 = vmax.xlane.f32.xlu0 %v3106_v62 }
 0xc59   :  { %v3121_v30 = vsel %vm1422_vm2, %v3099_v9, -inf }
 0xc5a   :  { %3122 = vmax.xlane.f32.xlu1 %v3121_v30 }
 0xc65   :  { %v3102_v24 = vpop.xlane.xlu1 %3101 }
 0xc66   :  { %v3124_v50 = vsub.f32 %v6018_v37, %v3102_v24 }
 0xc68   :  { %v3132_v1 = vmul.f32 1.442695, %v3124_v50 }
 0xc69   :  { %v3111_v59 = vpop.xlane.xlu1 %3110 }
 0xc6a   :  { %v3127_v14 = vsub.f32 %v6022_v31, %v3111_v59  ;;  %v3033_v31 = vcombine.high %v3017_v20, %v3017_v20 }
 0xc6c   :  { %v3138_v55 = vmul.f32 1.442695, %v3127_v14  ;;  %vm3042_vm7 = vcmp.ne.s32.totalorder %v3033_v31, 0 }
 0xc6d   :  { %v3050_v5 = vsel %vm3042_vm7, 1, %v4778_v13 }
 0xc6e   :  { %v3079_v8 = vrot.slane %v3050_v5, %v6007_v54 }
 0xc70   :  { %vm3090_vm8 = vcmp.eq.s32.totalorder %v3079_v8, 1 }
 0xc95   :  { %v2617_v21 = vpop.f32.mrb[26].mxu1 }
 0xc96   :  { %v3096_v33 = vsel %vm3088_vm6, %v2617_v21, -1e+09  ;;  %v4241_v40 = vpop.f32.mrb[27].mxu1 }
 0xc97   :  { %v3112_v47 = vsel %vm1422_vm2, %v3096_v33, -inf }
 0xc98   :  { %3113 = vmax.xlane.f32.xlu0 %v3112_v47 }
 0xca5   :  { %v3105_v25 = vpop.xlane.xlu0 %3104 }
 0xca6   :  { %v3125_v38 = vsub.f32 %v3093_v52, %v3105_v25 }
 0xca7   :  { %v3117_v48 = vpop.xlane.xlu1 %3116 }
 0xca8   :  { %v3134_v3 = vmul.f32 1.442695, %v3125_v38  ;;  %v3129_v10 = vsub.f32 %v3097_v63, %v3117_v48 }
 0xcaa   :  { %4672 = vpow2.f32 %v3134_v3  ;;  %v3142_v32 = vmul.f32 1.442695, %v3129_v10 }
 0xcab   :  { %4674 = vpow2.f32 %v3138_v55 }
 0xcac   :  { %4676 = vpow2.f32 %v3142_v32 }
 0xcad   :  { %4678 = vpow2.f32 %v3132_v1 }
 0xcb4   :  { %v4673_v39 = vpop.eup %4672 }
 0xcb5   :  { %v3151_v15 = vsel %vm1422_vm2, %v4673_v39, 0.0  ;;  %v4675_v61 = vpop.eup %4674 }
 0xcb6   :  { %3152 = vadd.xlane.f32.xlu1 %v3151_v15  ;;  %v3157_v45 = vsel %vm1422_vm2, %v4675_v61, 0.0  ;;  %v4677_v12 = vpop.eup %4676 }
 0xcb7   :  { %v3163_v22 = vsel %vm1422_vm2, %v4677_v12, 0.0  ;;  %v4679_v34 = vpop.eup %4678 }
 0xcb8   :  { %v3148_v42 = vsel %vm1422_vm2, %v4679_v34, 0.0 }
 0xcba   :  { %3158 = vadd.xlane.f32.xlu1 %v3157_v45 }
 0xcbe   :  { %3164 = vadd.xlane.f32.xlu1 %v3163_v22 }
 0xcd5   :  { %v2859_v26 = vpop.f32.mrb[28].mxu1 }
 0xcd6   :  { %v3098_v23 = vsel %vm3090_vm8, %v2859_v26, -1e+09  ;;  %v4311_v51 = vpop.f32.mrb[29].mxu1 }
 0xcd7   :  { %v3118_v0 = vsel %vm1422_vm2, %v3098_v23, -inf }
 0xcd8   :  { %3119 = vmax.xlane.f32.xlu0 %v3118_v0 }
 0xcdc   :  { %3149 = vadd.xlane.f32.xlu0 %v3148_v42 }
 0xce5   :  { %v3108_v4 = vpop.xlane.xlu0 %3107 }
 0xce6   :  { %v3126_v37 = vsub.f32 %v3094_v19, %v3108_v4 }
 0xce7   :  { %v3123_v57 = vpop.xlane.xlu1 %3122 }
 0xce8   :  { %v3136_v60 = vmul.f32 1.442695, %v3126_v37  ;;  %v3131_v58 = vsub.f32 %v3099_v9, %v3123_v57 }
 0xcea   :  { %4680 = vpow2.f32 %v3136_v60  ;;  %v3146_v13 = vmul.f32 1.442695, %v3131_v58 }
 0xcec   :  { %4682 = vpow2.f32 %v3146_v13 }
 0xcf4   :  { %v4681_v54 = vpop.eup %4680 }
 0xcf5   :  { %v3154_v17 = vsel %vm1422_vm2, %v4681_v54, 0.0 }
 0xcf6   :  { %v4683_v43 = vpop.eup %4682  ;;  %3155 = vadd.xlane.f32.xlu0 %v3154_v17 }
 0xcf7   :  { %v3169_v52 = vsel %vm1422_vm2, %v4683_v43, 0.0 }
 0xcf8   :  { %3170 = vadd.xlane.f32.xlu1 %v3169_v52 }
 0xd25   :  { %v3114_v6 = vpop.xlane.xlu0 %3113 }
 0xd26   :  { %v3128_v18 = vsub.f32 %v3096_v33, %v3114_v6 }
 0xd28   :  { %v3140_v53 = vmul.f32 1.442695, %v3128_v18 }
 0xd2a   :  { %4684 = vpow2.f32 %v3140_v53 }
 0xd34   :  { %v6076_v63 = vpop.eup %4684 }
 0xd35   :  { %v3160_v36 = vsel %vm1422_vm2, %v6076_v63, 0.0 }
 0xd36   :  { %3161 = vadd.xlane.f32.xlu0 %v3160_v36 }
 0xd43   :  { %v3153_v11 = vpop.xlane.xlu1 %3152 }
 0xd44   :  { %4686 = vrcp.f32 %v3153_v11 }
 0xd47   :  { %v3159_v35 = vpop.xlane.xlu1 %3158 }
 0xd48   :  { %4688 = vrcp.f32 %v3159_v35 }
 0xd4b   :  { %v3165_v46 = vpop.xlane.xlu1 %3164 }
 0xd4c   :  { %4690 = vrcp.f32 %v3165_v46 }
 0xd4e   :  { %v4687_v28 = vpop.eup %4686 }
 0xd4f   :  { %v3175_v41 = vmul.f32 %v4687_v28, %v4673_v39 }
 0xd51   :  { %v3189_v44 = vadd.f32 1e-10, %v3175_v41 }
 0xd52   :  { %v4689_v56 = vpop.eup %4688 }
 0xd53   :  { %4692 = vlog2.f32 %v3189_v44  ;;  %v3179_v29 = vmul.f32 %v4689_v56, %v4675_v61 }
 0xd55   :  { %v3191_v19 = vadd.f32 1e-10, %v3179_v29 }
 0xd56   :  { %v4691_v49 = vpop.eup %4690 }
 0xd57   :  { %4694 = vlog2.f32 %v3191_v19  ;;  %v3183_v16 = vmul.f32 %v4691_v49, %v4677_v12 }
 0xd59   :  { %v3193_v62 = vadd.f32 1e-10, %v3183_v16 }
 0xd5b   :  { %4696 = vlog2.f32 %v3193_v62 }
 0xd5d   :  { %v4693_v9 = vpop.eup %4692 }
 0xd5e   :  { %v3199_v27 = vmul.f32 0.6931472, %v4693_v9 }
 0xd60   :  { %3213 = vst [vmem:[#allocation3 + $0x4] sm:$0xf] %v3199_v27 }
 0xd61   :  { %v4695_v30 = vpop.eup %4694 }
 0xd62   :  { %v3203_v20 = vmul.f32 0.6931472, %v4695_v30 }
 0xd64   :  { %3215 = vst [vmem:[#allocation3 + $0xc] sm:$0xf] %v3203_v20 }
 0xd65   :  { %v4697_v2 = vpop.eup %4696  ;;  %v3120_v7 = vpop.xlane.xlu0 %3119 }
 0xd66   :  { %v3207_v21 = vmul.f32 0.6931472, %v4697_v2  ;;  %v3130_v33 = vsub.f32 %v3098_v23, %v3120_v7 }
 0xd68   :  { %3217 = vst [vmem:[#allocation3 + $0x14] sm:$0xf] %v3207_v21  ;;  %v3144_v40 = vmul.f32 1.442695, %v3130_v33 }
 0xd69   :  { %v3150_v47 = vpop.xlane.xlu0 %3149 }
 0xd6a   :  { %4698 = vpow2.f32 %v3144_v40 }
 0xd6b   :  { %4700 = vrcp.f32 %v3150_v47 }
 0xd74   :  { %v4699_v24 = vpop.eup %4698 }
 0xd75   :  { %v4701_v59 = vpop.eup %4700  ;;  %v3166_v14 = vsel %vm1422_vm2, %v4699_v24, 0.0 }
 0xd76   :  { %v3173_v25 = vmul.f32 %v4701_v59, %v4679_v34  ;;  %3167 = vadd.xlane.f32.xlu0 %v3166_v14 }
 0xd78   :  { %v3188_v38 = vadd.f32 1e-10, %v3173_v25 }
 0xd7a   :  { %4702 = vlog2.f32 %v3188_v38 }
 0xd83   :  { %v3156_v48 = vpop.xlane.xlu0 %3155 }
 0xd84   :  { %v4703_v55 = vpop.eup %4702  ;;  %4704 = vrcp.f32 %v3156_v48 }
 0xd85   :  { %v3197_v3 = vmul.f32 0.6931472, %v4703_v55  ;;  %v3171_v10 = vpop.xlane.xlu1 %3170 }
 0xd86   :  { %4706 = vrcp.f32 %v3171_v10 }
 0xd87   :  { %3212 = vst [vmem:[#allocation3] sm:$0xf] %v3197_v3 }
 0xd8e   :  { %v4705_v32 = vpop.eup %4704 }
 0xd8f   :  { %v3177_v39 = vmul.f32 %v4705_v32, %v4681_v54 }
 0xd90   :  { %v4707_v15 = vpop.eup %4706 }
 0xd91   :  { %v3190_v61 = vadd.f32 1e-10, %v3177_v39  ;;  %v3187_v45 = vmul.f32 %v4707_v15, %v4683_v43 }
 0xd93   :  { %4708 = vlog2.f32 %v3190_v61  ;;  %v3195_v12 = vadd.f32 1e-10, %v3187_v45 }
 0xd95   :  { %4710 = vlog2.f32 %v3195_v12 }
 0xd9d   :  { %v4709_v22 = vpop.eup %4708 }
 0xd9e   :  { %v3201_v31 = vmul.f32 0.6931472, %v4709_v22 }
 0xd9f   :  { %v4711_v50 = vpop.eup %4710 }
 0xda0   :  { %3214 = vst [vmem:[#allocation3 + $0x8] sm:$0xf] %v3201_v31  ;;  %v3211_v1 = vmul.f32 0.6931472, %v4711_v50 }
 0xda2   :  { %3219 = vst [vmem:[#allocation3 + $0x1c] sm:$0xf] %v3211_v1 }
 0xda3   :  { %4732 = shalt.err (!%p4729_p4)
}
 0xda4   :  { %s4733_s22 = scalar_lea.hbm %s6119_s11, 128 }
 0xda5   :  { %p4734_p5 = scmp.ne.s32.totalorder %s6119_s11, %s4733_s22  ;;  %p4737_p6 = scmp.lt.u32.totalorder %s4733_s22, %s6119_s11 }
 0xda7   :  { %p4739_p7 = pnand %p4737_p6, %p4734_p5 }
 0xda9   :  { %4742 = shalt.err (!%p4739_p7)
}
 0xdaa   :  { %3241 = dma.vmem_to_hbm [thread:$0]  %s3239_s18, 128, %s6119_s11, [#allocation6]  }
 0xdab   :  { %s4780_s6 = smov [#allocation3]  }
 0xdac   :  { %s3225_s28 = sshll.u32 %s4780_s6, 4  ;;  %s3226_s28 = int_to_ptr.vmem [resolvable:$true] %s3225_s28 }
 0xdad   :  { %s4743_s11 = scalar_lea.vmem %s3226_s28, 512  ;;  %p4748_p9 = scmp.lt.s32.totalorder %s3226_s28, %s3226_s28 }
 0xdae   :  { %p4744_p8 = scmp.ne.s32.totalorder %s3226_s28, %s4743_s11  ;;  %p4749_p10 = scmp.lt.s32.totalorder %s4743_s11, %s4743_s11 }
 0xdb0   :  { %p4750_p11 = por %p4749_p10, %p4748_p9 }
 0xdb2   :  { %p4751_p12 = pnand %p4750_p11, %p4744_p8 }
 0xdc3   :  { %v3162_v5 = vpop.xlane.xlu0 %3161 }
 0xdc4   :  { %4712 = vrcp.f32 %v3162_v5 }
 0xdce   :  { %v4713_v8 = vpop.eup %4712 }
 0xdcf   :  { %v3181_v26 = vmul.f32 %v4713_v8, %v6076_v63 }
 0xdd1   :  { %v3192_v23 = vadd.f32 1e-10, %v3181_v26 }
 0xdd3   :  { %4714 = vlog2.f32 %v3192_v23 }
 0xddd   :  { %v4715_v51 = vpop.eup %4714 }
 0xdde   :  { %v3205_v0 = vmul.f32 0.6931472, %v4715_v51 }
 0xde0   :  { %3216 = vst [vmem:[#allocation3 + $0x10] sm:$0xf] %v3205_v0 }
 0xe03   :  { %v3168_v34 = vpop.xlane.xlu0 %3167 }
 0xe04   :  { %4716 = vrcp.f32 %v3168_v34 }
 0xe0e   :  { %v4717_v42 = vpop.eup %4716 }
 0xe0f   :  { %v3185_v4 = vmul.f32 %v4717_v42, %v4699_v24 }
 0xe11   :  { %v3194_v37 = vadd.f32 1e-10, %v3185_v4 }
 0xe13   :  { %4718 = vlog2.f32 %v3194_v37 }
 0xe1d   :  { %v4719_v57 = vpop.eup %4718 }
 0xe1e   :  { %v3209_v60 = vmul.f32 0.6931472, %v4719_v57 }
 0xe20   :  { %3218 = vst [vmem:[#allocation3 + $0x18] sm:$0xf] %v3209_v60 }
 0xe21   :  { %4754 = shalt.err (!%p4751_p12)
}
 0xe22   :  { %s4755_s30 = scalar_lea.hbm %s6118_s10, 512 }
 0xe23   :  { %p4756_p13 = scmp.ne.s32.totalorder %s6118_s10, %s4755_s30  ;;  %p4759_p0 = scmp.lt.u32.totalorder %s4755_s30, %s6118_s10 }
 0xe25   :  { %p4761_p1 = pnand %p4759_p0, %p4756_p13 }
 0xe27   :  { %4764 = shalt.err (!%p4761_p1)
}
 0xe28   :  { %s4781_s14 = smov 4  }
 0xe29   :  { %3231 = dma.vmem_to_hbm [thread:$0]  %s3226_s28, 512, %s6118_s10, [#allocation4], %s4772_s8, %s4772_s8, %s4781_s14  }
 0xe2a   :  { %4765 = dma.done.wait [#allocation4], 512  }
 0xe2b   :  { %4766 = vsyncadd [#allocation4], 4294966784 }
 0xe2c   :  { %4767 = dma.done.wait [#allocation6], 128  }
 0xe2d   :  { %4768 = vsyncadd [#allocation6], 4294967168 }
 0xe2e   :  { %3248 = vsyncpa [#allocation4], 1 }
 0xe2f   :  { %3249 = vsyncpa [#allocation6], 1 }

</bundles_post_ra>
